<compile_context>
chip_gen: v7x
topology: tpu7x:2x2x1
jax: 0.10.0
libtpu: 0.0.40
codegen_flags: <defaults>
</compile_context>

<pallas_src>
import math

import jax
import jax.numpy as jnp
from jax import lax
from jax.experimental import pallas as pl
from jax.experimental.pallas import tpu as pltpu


# --------------------------------------------------------------------------
# Fused Pallas kernel: all encoder layers, both batch elements, one grid step.
# --------------------------------------------------------------------------
def _make_encoder_kernel(num_layers: int, n_head: int, d_model: int, ff_dim: int):
    D, F, H = d_model, ff_dim, n_head
    dh = D // H
    f32 = jnp.float32

    def layer_norm(v, g, b):
        mu = jnp.mean(v, axis=-1, keepdims=True)
        var = jnp.mean((v - mu) ** 2, axis=-1, keepdims=True)
        return (v - mu) * lax.rsqrt(var + 1e-5) * g + b

    def kernel(x_ref, bias_ref, kw_ref, ve_ref, mm_ref,
               wd_ref, wf_ref, bs_ref, gw_ref, out_ref):
        x = x_ref[...]          # (N, D)  N = B*S, batch stacked on sublanes
        bias = bias_ref[...]    # (N, N)  additive attn bias: 0 valid / -1e9
        kw = kw_ref[...]        # (D, N)  kv_w @ key_emb^T / sqrt(D)
        ve = ve_ref[...]        # (N, D)  value embeddings
        mm = mm_ref[...]        # (N, N)  block-diag clamped mask matrix
        gw = gw_ref[...]        # (D, 2D) [gate_w1^T | gate_w2^T]
        g_w1 = gw[:, 0:D]
        g_w2 = gw[:, D:2 * D]

        for l in range(num_layers):
            wd = wd_ref[l]                      # (D, 3D + D + F)
            qkv_w = wd[:, 0:3 * D]
            fc_w = wd[:, 3 * D:4 * D]
            ffn_w1 = wd[:, 4 * D:4 * D + F]
            ffn_w2 = wf_ref[l]                  # (F, D)
            bsl = bs_ref[l]                     # (9, 3D)  one bias per row
            qkv_b = bsl[0:1, 0:3 * D]
            fc_b = bsl[1:2, 0:D]
            n1g, n1b = bsl[2:3, 0:D], bsl[3:4, 0:D]
            n2g, n2b = bsl[4:5, 0:D], bsl[5:6, 0:D]
            ffn_b1 = bsl[6:7, 0:F]
            ffn_b2 = bsl[7:8, 0:D]
            g_b = bsl[8:9, 0:D]

            # ---------- MultiHeadAttn (scale=False -> unscaled scores) ----------
            residual = x
            qkv = jnp.dot(x, qkv_w, preferred_element_type=f32) + qkv_b  # (N,3D)
            ctx = []
            for h in range(H):                  # unrolled per-head loop (no
                qh = qkv[:, h * dh:(h + 1) * dh]            # sublane relayouts)
                kh = qkv[:, D + h * dh:D + (h + 1) * dh]
                vh = qkv[:, 2 * D + h * dh:2 * D + (h + 1) * dh]
                # transposed-RHS contraction: no explicit (N,dh)->(dh,N) transpose
                s = lax.dot_general(qh, kh, (((1,), (1,)), ((), ())),
                                    preferred_element_type=f32) + bias
                s = s - jnp.max(s, axis=-1, keepdims=True)
                p = jnp.exp(s)                  # masked entries -> exactly 0
                p = p * pl.reciprocal(jnp.sum(p, axis=-1, keepdims=True),
                                      approx=True)
                ctx.append(jnp.dot(p, vh, preferred_element_type=f32))
            attn = jnp.concatenate(ctx, axis=1)                          # (N, D)
            attn = jnp.dot(attn, fc_w, preferred_element_type=f32) + fc_b
            x1 = layer_norm(attn + residual, n1g, n1b)

            # ---------- FFN ----------
            hid = jnp.maximum(
                jnp.dot(x1, ffn_w1, preferred_element_type=f32) + ffn_b1, 0.0)
            ffn = jnp.dot(hid, ffn_w2, preferred_element_type=f32) + ffn_b2
            x2 = layer_norm(x1 + ffn, n2g, n2b)

            # ---------- KeyValueMemoryNetwork ----------
            # u = (x2 @ kv_w) @ ke^T / sqrt(D)  ==  x2 @ kw  (kw precomputed)
            u = jnp.dot(x2, kw, preferred_element_type=f32)              # (N, N)
            # Overflow-safe softmax: subtract the row max over *masked-in* keys;
            # epsilon is rescaled so the result equals the reference
            # exp(u)*mm / (sum(exp(u)*mm) + 1e-10) exactly (barring overflow).
            um = jnp.max(jnp.where(mm > 0.0, u, -1e30), axis=-1, keepdims=True)
            um = jnp.maximum(um, 0.0)           # fully-masked rows stay finite
            d = jnp.exp(jnp.where(mm > 0.0, u, um) - um) * mm
            denom = jnp.sum(d, axis=-1, keepdims=True) + 1e-10 * jnp.exp(-um)
            pmem = d * pl.reciprocal(denom, approx=True)
            y = jnp.dot(pmem, ve, preferred_element_type=f32)            # (N, D)

            # ---------- Fusion (gating) ----------
            # TODO(synk): FusionAttention is not defined in the reference source;
            # using the GatingMechanism formula (same hidden size) as a stand-in.
            gated = (jnp.dot(x2, g_w1, preferred_element_type=f32)
                     + jnp.dot(y, g_w2, preferred_element_type=f32) + g_b)
            gate = jax.nn.sigmoid(gated)
            x = x2 * gate + y * (1.0 - gate)

        # (N, 32) < 128 lanes -> masked store; negligible at this size.
        out_ref[...] = x

    return kernel


# --------------------------------------------------------------------------
# Parameter slab packing (wrapper side, traced once).
# --------------------------------------------------------------------------
def _pack_params(layer_params, gate_params, d_model, ff_dim):
    D, F = d_model, ff_dim
    width = max(3 * D, F)
    g_w1t, g_w2t, g_b = gate_params
    wd_list, wf_list, b_list = [], [], []
    for lp in layer_params:
        (qkv_w, qkv_b, fc_w, fc_b, n1g, n1b, n2g, n2b,
         ffn_w1, ffn_b1, ffn_w2, ffn_b2) = lp
        wd_list.append(jnp.concatenate([qkv_w, fc_w, ffn_w1], axis=1))  # (D,4D+F)
        wf_list.append(ffn_w2)                                          # (F, D)
        rows = [qkv_b, fc_b, n1g, n1b, n2g, n2b, ffn_b1, ffn_b2, g_b]
        rows = [jnp.pad(r, ((0, 0), (0, width - r.shape[1]))) for r in rows]
        b_list.append(jnp.concatenate(rows, axis=0))                    # (9, width)
    wd = jnp.stack(wd_list)                      # (L, D, 4D+F)
    wf = jnp.stack(wf_list)                      # (L, F, D)
    bs = jnp.stack(b_list)                       # (L, 9, width)
    gw = jnp.concatenate([g_w1t, g_w2t], axis=1)  # (D, 2D)
    return wd, wf, bs, gw


# --------------------------------------------------------------------------
# Wrapper: one pallas_call, single grid step, whole arrays resident in VMEM.
# --------------------------------------------------------------------------
def _run_encoder(x, bias, kw, ve, mm, wd, wf, bs, gw, *,
                 num_layers, n_head, d_model, ff_dim):
    N, D = x.shape
    F = ff_dim
    dh = D // n_head
    kernel = _make_encoder_kernel(num_layers, n_head, D, F)

    # advisory cost numbers (kernel is launch/latency bound)
    flops = num_layers * (2 * N * D * 3 * D
                          + n_head * (2 * N * dh * N + 2 * N * N * dh)
                          + 2 * N * D * D
                          + 2 * N * D * F + 2 * N * F * D
                          + 2 * N * D * N + 2 * N * N * D
                          + 2 * 2 * N * D * D)
    transcendentals = num_layers * (n_head * N * N + N * N + 2 * N + N * D)
    bytes_accessed = 4 * (x.size + bias.size + kw.size + ve.size + mm.size
                          + wd.size + wf.size + bs.size + gw.size + x.size)
    cost = pl.CostEstimate(flops=flops, transcendentals=transcendentals,
                           bytes_accessed=bytes_accessed)

    return pl.pallas_call(
        kernel,
        out_shape=jax.ShapeDtypeStruct((N, D), jnp.float32),
        cost_estimate=cost,
    )(x, bias, kw, ve, mm, wd, wf, bs, gw)


# --------------------------------------------------------------------------
# Plain-JAX glue: sinusoidal positional embedding, gathers, mask/bias precompute.
# --------------------------------------------------------------------------
def sinusoidal_table(num_embeddings, dim, padding_idx=0):
    half = dim // 2
    freq = jnp.exp(jnp.arange(half, dtype=jnp.float32)
                   * -(math.log(10000.0) / (half - 1)))
    ang = jnp.arange(num_embeddings, dtype=jnp.float32)[:, None] * freq[None, :]
    emb = jnp.concatenate([jnp.sin(ang), jnp.cos(ang)], axis=1)
    return emb.at[padding_idx].set(0.0)


def make_positions(mask, padding_idx=0):
    m = (mask != padding_idx).astype(jnp.int32)
    return jnp.cumsum(m, axis=1) * m + padding_idx


# --------------------------------------------------------------------------
# Parameter construction (deterministic, synthetic).
# --------------------------------------------------------------------------
def init_params(key, num_layers, d_model, ff_dim, kv_vocab, kv_feat_vocab):
    D, F = d_model, ff_dim

    def u(k, shape, fan_in):
        s = 1.0 / math.sqrt(fan_in)
        return jax.random.uniform(k, shape, jnp.float32, -s, s)

    keys = iter(jax.random.split(key, 64))

    # shared across layers (single kv_memory / gating module in the reference)
    kv_w = u(next(keys), (D, D), D)                       # KVMemory.weight
    g_w1t = u(next(keys), (D, D), D)                      # gate w1, pre-transposed
    g_w2t = u(next(keys), (D, D), D)                      # gate w2, pre-transposed
    g_b = u(next(keys), (1, D), D)                        # gate bias
    key_table = u(next(keys), (kv_vocab, D), D).at[0].set(0.0)       # padding_idx=0
    val_table = u(next(keys), (kv_feat_vocab, D), D).at[0].set(0.0)  # padding_idx=0

    layers = []
    for _ in range(num_layers):
        layers.append([
            u(next(keys), (D, 3 * D), D),                 # qkv weight (in, out)
            u(next(keys), (1, 3 * D), D),                 # qkv bias
            u(next(keys), (D, D), D),                     # fc weight
            u(next(keys), (1, D), D),                     # fc bias
            jnp.ones((1, D), jnp.float32),                # norm1 gamma
            jnp.zeros((1, D), jnp.float32),               # norm1 beta
            jnp.ones((1, D), jnp.float32),                # norm2 gamma
            jnp.zeros((1, D), jnp.float32),               # norm2 beta
            u(next(keys), (D, F), D),                     # ffn w1
            u(next(keys), (1, F), D),                     # ffn b1
            u(next(keys), (F, D), F),                     # ffn w2
            u(next(keys), (1, D), F),                     # ffn b2
        ])
    return layers, (kv_w, g_w1t, g_w2t, g_b), key_table, val_table


# --------------------------------------------------------------------------
# Full encoder forward.
# --------------------------------------------------------------------------
def adapted_transformer_encoder(x, mask, additional_tuple,
                                layer_params, shared_params,
                                key_table, val_table, n_head, pos_table):
    chars, features, pos_matrix, nan_matrix = additional_tuple  # nan_matrix unused
    del nan_matrix
    kv_w, g_w1t, g_w2t, g_b = shared_params

    B, S, D = x.shape
    N = B * S
    F = layer_params[0][8].shape[1]

    # pos_embed == 'sin': x = x + pos_embed(mask)
    positions = make_positions(mask, 0)
    xp = x + jnp.take(pos_table, positions, axis=0)
    x_flat = xp.reshape(N, D)                                    # batch on sublanes

    # embedding gathers (glue)
    key_emb = jnp.take(key_table, chars, axis=0).reshape(N, D)
    val_emb = jnp.take(val_table, features, axis=0).reshape(N, D)

    # precompute once (reused by every layer inside the fused kernel)
    kv_scale = float(D) ** 0.5      # np.power(emb_size, 0.5 * temper), temper=1
    kw = jnp.dot(kv_w, key_emb.T) / kv_scale                     # (D, N)

    # block-diagonal (over batch) clamped mask matrix & additive attention bias
    mm_b = jnp.clip(pos_matrix.astype(jnp.float32), 0.0, 1.0)    # (B, S, S)
    eye_b = jnp.eye(B, dtype=jnp.float32)
    mm = jnp.einsum('bc,bij->bicj', eye_b, mm_b).reshape(N, N)
    bidx = jnp.arange(N, dtype=jnp.int32) // S
    same_batch = bidx[:, None] == bidx[None, :]
    key_valid = mask.reshape(N) != 0
    bias = jnp.where(same_batch & key_valid[None, :], 0.0, -1e9).astype(jnp.float32)

    wd, wf, bs, gw = _pack_params(layer_params, (g_w1t, g_w2t, g_b), D, F)

    out_flat = _run_encoder(x_flat, bias, kw, val_emb, mm, wd, wf, bs, gw,
                            num_layers=len(layer_params), n_head=n_head,
                            d_model=D, ff_dim=F)
    # memory_dropout / gate_dropout are identity (p=0 / eval)
    return out_flat.reshape(B, S, D)


# --------------------------------------------------------------------------
if __name__ == "__main__":
    B, S, D, H, F = 2, 8, 32, 4, 64
    NUM_LAYERS = 2
    KV_VOCAB, KV_FEAT_VOCAB = 20, 10

    root = jax.random.PRNGKey(0)
    k_x, k_c, k_f, k_p = jax.random.split(root, 4)

    mask = jnp.array([[1] * S, [1] * (S - 2) + [0] * 2], dtype=jnp.int32)   # (B, S)
    x = 0.1 * jax.random.normal(k_x, (B, S, D), jnp.float32)
    chars = jax.random.randint(k_c, (B, S), 1, KV_VOCAB) * mask
    features = jax.random.randint(k_f, (B, S), 1, KV_FEAT_VOCAB) * mask
    pos_matrix = (mask[:, :, None] * mask[:, None, :]).astype(jnp.float32)  # (B,S,S)
    nan_matrix = jnp.zeros_like(pos_matrix)                                 # unused

    layer_params, shared_params, key_table, val_table = init_params(
        k_p, NUM_LAYERS, D, F, KV_VOCAB, KV_FEAT_VOCAB)
    pos_table = sinusoidal_table(1024, D, padding_idx=0)

    out = adapted_transformer_encoder(
        x, mask, (chars, features, pos_matrix, nan_matrix),
        layer_params, shared_params, key_table, val_table, H, pos_table)

    out = jax.block_until_ready(out)
    assert out.shape == (B, S, D)
    assert bool(jnp.all(jnp.isfinite(out)))
    print("KERNEL_OK")
</pallas_src>

<mosaic_0001>
module attributes {stable_mosaic.version = 11 : i64} {
  func.func @kernel(%arg0: memref<16x32xf32, #tpu.memory_space<vmem>>, %arg1: memref<16x16xf32, #tpu.memory_space<vmem>>, %arg2: memref<32x16xf32, #tpu.memory_space<vmem>>, %arg3: memref<16x32xf32, #tpu.memory_space<vmem>>, %arg4: memref<16x16xf32, #tpu.memory_space<vmem>>, %arg5: memref<2x32x192xf32, #tpu.memory_space<vmem>>, %arg6: memref<2x64x32xf32, #tpu.memory_space<vmem>>, %arg7: memref<2x9x96xf32, #tpu.memory_space<vmem>>, %arg8: memref<32x64xf32, #tpu.memory_space<vmem>>, %arg9: memref<16x32xf32, #tpu.memory_space<vmem>>) attributes {dimension_semantics = [], scalar_prefetch = 0 : i64, scratch_operands = 0 : i64, tpu.core_type = #tpu.core_type<tc>} {
    %c0 = arith.constant 0 : index
    %c0_0 = arith.constant 0 : index
    %0 = vector.load %arg0[%c0, %c0_0] : memref<16x32xf32, #tpu.memory_space<vmem>>, vector<16x32xf32>
    %c0_1 = arith.constant 0 : index
    %c0_2 = arith.constant 0 : index
    %1 = vector.load %arg1[%c0_1, %c0_2] : memref<16x16xf32, #tpu.memory_space<vmem>>, vector<16x16xf32>
    %c0_3 = arith.constant 0 : index
    %c0_4 = arith.constant 0 : index
    %2 = vector.load %arg2[%c0_3, %c0_4] : memref<32x16xf32, #tpu.memory_space<vmem>>, vector<32x16xf32>
    %c0_5 = arith.constant 0 : index
    %c0_6 = arith.constant 0 : index
    %3 = vector.load %arg3[%c0_5, %c0_6] : memref<16x32xf32, #tpu.memory_space<vmem>>, vector<16x32xf32>
    %c0_7 = arith.constant 0 : index
    %c0_8 = arith.constant 0 : index
    %4 = vector.load %arg4[%c0_7, %c0_8] : memref<16x16xf32, #tpu.memory_space<vmem>>, vector<16x16xf32>
    %c0_9 = arith.constant 0 : index
    %c0_10 = arith.constant 0 : index
    %5 = vector.load %arg8[%c0_9, %c0_10] : memref<32x64xf32, #tpu.memory_space<vmem>>, vector<32x64xf32>
    %6 = vector.extract_strided_slice %5 {offsets = [0, 0], sizes = [32, 32], strides = [1, 1]} : vector<32x64xf32> to vector<32x32xf32>
    %7 = vector.extract_strided_slice %5 {offsets = [0, 32], sizes = [32, 32], strides = [1, 1]} : vector<32x64xf32> to vector<32x32xf32>
    %c0_11 = arith.constant 0 : index
    %c0_12 = arith.constant 0 : index
    %c0_13 = arith.constant 0 : index
    %8 = vector.load %arg5[%c0_11, %c0_12, %c0_13] : memref<2x32x192xf32, #tpu.memory_space<vmem>>, vector<1x32x192xf32>
    %9 = vector.shape_cast %8 : vector<1x32x192xf32> to vector<32x192xf32>
    %10 = vector.extract_strided_slice %9 {offsets = [0, 0], sizes = [32, 96], strides = [1, 1]} : vector<32x192xf32> to vector<32x96xf32>
    %11 = vector.extract_strided_slice %9 {offsets = [0, 96], sizes = [32, 32], strides = [1, 1]} : vector<32x192xf32> to vector<32x32xf32>
    %12 = vector.extract_strided_slice %9 {offsets = [0, 128], sizes = [32, 64], strides = [1, 1]} : vector<32x192xf32> to vector<32x64xf32>
    %c0_14 = arith.constant 0 : index
    %c0_15 = arith.constant 0 : index
    %c0_16 = arith.constant 0 : index
    %13 = vector.load %arg6[%c0_14, %c0_15, %c0_16] : memref<2x64x32xf32, #tpu.memory_space<vmem>>, vector<1x64x32xf32>
    %14 = vector.shape_cast %13 : vector<1x64x32xf32> to vector<64x32xf32>
    %c0_17 = arith.constant 0 : index
    %c0_18 = arith.constant 0 : index
    %c0_19 = arith.constant 0 : index
    %15 = vector.load %arg7[%c0_17, %c0_18, %c0_19] : memref<2x9x96xf32, #tpu.memory_space<vmem>>, vector<1x9x96xf32>
    %16 = vector.shape_cast %15 : vector<1x9x96xf32> to vector<9x96xf32>
    %17 = vector.extract_strided_slice %16 {offsets = [0, 0], sizes = [1, 96], strides = [1, 1]} : vector<9x96xf32> to vector<1x96xf32>
    %18 = vector.extract_strided_slice %16 {offsets = [1, 0], sizes = [1, 32], strides = [1, 1]} : vector<9x96xf32> to vector<1x32xf32>
    %19 = vector.extract_strided_slice %16 {offsets = [2, 0], sizes = [1, 32], strides = [1, 1]} : vector<9x96xf32> to vector<1x32xf32>
    %20 = vector.extract_strided_slice %16 {offsets = [3, 0], sizes = [1, 32], strides = [1, 1]} : vector<9x96xf32> to vector<1x32xf32>
    %21 = vector.extract_strided_slice %16 {offsets = [4, 0], sizes = [1, 32], strides = [1, 1]} : vector<9x96xf32> to vector<1x32xf32>
    %22 = vector.extract_strided_slice %16 {offsets = [5, 0], sizes = [1, 32], strides = [1, 1]} : vector<9x96xf32> to vector<1x32xf32>
    %23 = vector.extract_strided_slice %16 {offsets = [6, 0], sizes = [1, 64], strides = [1, 1]} : vector<9x96xf32> to vector<1x64xf32>
    %24 = vector.extract_strided_slice %16 {offsets = [7, 0], sizes = [1, 32], strides = [1, 1]} : vector<9x96xf32> to vector<1x32xf32>
    %25 = vector.extract_strided_slice %16 {offsets = [8, 0], sizes = [1, 32], strides = [1, 1]} : vector<9x96xf32> to vector<1x32xf32>
    %cst = arith.constant dense<0.000000e+00> : vector<16x96xf32>
    %26 = tpu.matmul %0, %10, %cst {dimension_numbers = #tpu.dot_dimension_numbers<[1], [0], [0], [1], [0, 0, 1, 1], [], []>} : vector<16x32xf32>, vector<32x96xf32>, vector<16x96xf32> -> vector<16x96xf32>
    %27 = vector.broadcast %17 : vector<1x96xf32> to vector<16x96xf32>
    %28 = arith.addf %26, %27 : vector<16x96xf32>
    %29 = vector.extract_strided_slice %28 {offsets = [0, 0], sizes = [16, 8], strides = [1, 1]} : vector<16x96xf32> to vector<16x8xf32>
    %30 = vector.extract_strided_slice %28 {offsets = [0, 32], sizes = [16, 8], strides = [1, 1]} : vector<16x96xf32> to vector<16x8xf32>
    %31 = vector.extract_strided_slice %28 {offsets = [0, 64], sizes = [16, 8], strides = [1, 1]} : vector<16x96xf32> to vector<16x8xf32>
    %cst_20 = arith.constant dense<0.000000e+00> : vector<16x16xf32>
    %32 = tpu.matmul %29, %30, %cst_20 {dimension_numbers = #tpu.dot_dimension_numbers<[1], [1], [0], [0], [0, 0, 1, 0], [], []>} : vector<16x8xf32>, vector<16x8xf32>, vector<16x16xf32> -> vector<16x16xf32>
    %33 = arith.addf %32, %1 : vector<16x16xf32>
    %cst_21 = arith.constant dense<0xFF800000> : vector<16xf32>
    %34 = vector.multi_reduction <maximumf>, %33, %cst_21 [1] : vector<16x16xf32> to vector<16xf32>
    %35 = vector.shape_cast %34 : vector<16xf32> to vector<16x1xf32>
    %36 = vector.broadcast %35 : vector<16x1xf32> to vector<16x16xf32>
    %37 = arith.subf %33, %36 : vector<16x16xf32>
    %38 = math.exp %37 : vector<16x16xf32>
    %cst_22 = arith.constant dense<0.000000e+00> : vector<16xf32>
    %39 = vector.multi_reduction <add>, %38, %cst_22 [1] : vector<16x16xf32> to vector<16xf32>
    %40 = vector.shape_cast %39 : vector<16xf32> to vector<16x1xf32>
    %41 = tpu.reciprocal %40 {approx = true} : vector<16x1xf32> -> vector<16x1xf32>
    %42 = vector.broadcast %41 : vector<16x1xf32> to vector<16x16xf32>
    %43 = arith.mulf %38, %42 : vector<16x16xf32>
    %cst_23 = arith.constant dense<0.000000e+00> : vector<16x8xf32>
    %44 = tpu.matmul %43, %31, %cst_23 {dimension_numbers = #tpu.dot_dimension_numbers<[1], [0], [0], [1], [0, 0, 1, 1], [], []>} : vector<16x16xf32>, vector<16x8xf32>, vector<16x8xf32> -> vector<16x8xf32>
    %45 = vector.extract_strided_slice %28 {offsets = [0, 8], sizes = [16, 8], strides = [1, 1]} : vector<16x96xf32> to vector<16x8xf32>
    %46 = vector.extract_strided_slice %28 {offsets = [0, 40], sizes = [16, 8], strides = [1, 1]} : vector<16x96xf32> to vector<16x8xf32>
    %47 = vector.extract_strided_slice %28 {offsets = [0, 72], sizes = [16, 8], strides = [1, 1]} : vector<16x96xf32> to vector<16x8xf32>
    %cst_24 = arith.constant dense<0.000000e+00> : vector<16x16xf32>
    %48 = tpu.matmul %45, %46, %cst_24 {dimension_numbers = #tpu.dot_dimension_numbers<[1], [1], [0], [0], [0, 0, 1, 0], [], []>} : vector<16x8xf32>, vector<16x8xf32>, vector<16x16xf32> -> vector<16x16xf32>
    %49 = arith.addf %48, %1 : vector<16x16xf32>
    %cst_25 = arith.constant dense<0xFF800000> : vector<16xf32>
    %50 = vector.multi_reduction <maximumf>, %49, %cst_25 [1] : vector<16x16xf32> to vector<16xf32>
    %51 = vector.shape_cast %50 : vector<16xf32> to vector<16x1xf32>
    %52 = vector.broadcast %51 : vector<16x1xf32> to vector<16x16xf32>
    %53 = arith.subf %49, %52 : vector<16x16xf32>
    %54 = math.exp %53 : vector<16x16xf32>
    %cst_26 = arith.constant dense<0.000000e+00> : vector<16xf32>
    %55 = vector.multi_reduction <add>, %54, %cst_26 [1] : vector<16x16xf32> to vector<16xf32>
    %56 = vector.shape_cast %55 : vector<16xf32> to vector<16x1xf32>
    %57 = tpu.reciprocal %56 {approx = true} : vector<16x1xf32> -> vector<16x1xf32>
    %58 = vector.broadcast %57 : vector<16x1xf32> to vector<16x16xf32>
    %59 = arith.mulf %54, %58 : vector<16x16xf32>
    %cst_27 = arith.constant dense<0.000000e+00> : vector<16x8xf32>
    %60 = tpu.matmul %59, %47, %cst_27 {dimension_numbers = #tpu.dot_dimension_numbers<[1], [0], [0], [1], [0, 0, 1, 1], [], []>} : vector<16x16xf32>, vector<16x8xf32>, vector<16x8xf32> -> vector<16x8xf32>
    %61 = vector.extract_strided_slice %28 {offsets = [0, 16], sizes = [16, 8], strides = [1, 1]} : vector<16x96xf32> to vector<16x8xf32>
    %62 = vector.extract_strided_slice %28 {offsets = [0, 48], sizes = [16, 8], strides = [1, 1]} : vector<16x96xf32> to vector<16x8xf32>
    %63 = vector.extract_strided_slice %28 {offsets = [0, 80], sizes = [16, 8], strides = [1, 1]} : vector<16x96xf32> to vector<16x8xf32>
    %cst_28 = arith.constant dense<0.000000e+00> : vector<16x16xf32>
    %64 = tpu.matmul %61, %62, %cst_28 {dimension_numbers = #tpu.dot_dimension_numbers<[1], [1], [0], [0], [0, 0, 1, 0], [], []>} : vector<16x8xf32>, vector<16x8xf32>, vector<16x16xf32> -> vector<16x16xf32>
    %65 = arith.addf %64, %1 : vector<16x16xf32>
    %cst_29 = arith.constant dense<0xFF800000> : vector<16xf32>
    %66 = vector.multi_reduction <maximumf>, %65, %cst_29 [1] : vector<16x16xf32> to vector<16xf32>
    %67 = vector.shape_cast %66 : vector<16xf32> to vector<16x1xf32>
    %68 = vector.broadcast %67 : vector<16x1xf32> to vector<16x16xf32>
    %69 = arith.subf %65, %68 : vector<16x16xf32>
    %70 = math.exp %69 : vector<16x16xf32>
    %cst_30 = arith.constant dense<0.000000e+00> : vector<16xf32>
    %71 = vector.multi_reduction <add>, %70, %cst_30 [1] : vector<16x16xf32> to vector<16xf32>
    %72 = vector.shape_cast %71 : vector<16xf32> to vector<16x1xf32>
    %73 = tpu.reciprocal %72 {approx = true} : vector<16x1xf32> -> vector<16x1xf32>
    %74 = vector.broadcast %73 : vector<16x1xf32> to vector<16x16xf32>
    %75 = arith.mulf %70, %74 : vector<16x16xf32>
    %cst_31 = arith.constant dense<0.000000e+00> : vector<16x8xf32>
    %76 = tpu.matmul %75, %63, %cst_31 {dimension_numbers = #tpu.dot_dimension_numbers<[1], [0], [0], [1], [0, 0, 1, 1], [], []>} : vector<16x16xf32>, vector<16x8xf32>, vector<16x8xf32> -> vector<16x8xf32>
    %77 = vector.extract_strided_slice %28 {offsets = [0, 24], sizes = [16, 8], strides = [1, 1]} : vector<16x96xf32> to vector<16x8xf32>
    %78 = vector.extract_strided_slice %28 {offsets = [0, 56], sizes = [16, 8], strides = [1, 1]} : vector<16x96xf32> to vector<16x8xf32>
    %79 = vector.extract_strided_slice %28 {offsets = [0, 88], sizes = [16, 8], strides = [1, 1]} : vector<16x96xf32> to vector<16x8xf32>
    %cst_32 = arith.constant dense<0.000000e+00> : vector<16x16xf32>
    %80 = tpu.matmul %77, %78, %cst_32 {dimension_numbers = #tpu.dot_dimension_numbers<[1], [1], [0], [0], [0, 0, 1, 0], [], []>} : vector<16x8xf32>, vector<16x8xf32>, vector<16x16xf32> -> vector<16x16xf32>
    %81 = arith.addf %80, %1 : vector<16x16xf32>
    %cst_33 = arith.constant dense<0xFF800000> : vector<16xf32>
    %82 = vector.multi_reduction <maximumf>, %81, %cst_33 [1] : vector<16x16xf32> to vector<16xf32>
    %83 = vector.shape_cast %82 : vector<16xf32> to vector<16x1xf32>
    %84 = vector.broadcast %83 : vector<16x1xf32> to vector<16x16xf32>
    %85 = arith.subf %81, %84 : vector<16x16xf32>
    %86 = math.exp %85 : vector<16x16xf32>
    %cst_34 = arith.constant dense<0.000000e+00> : vector<16xf32>
    %87 = vector.multi_reduction <add>, %86, %cst_34 [1] : vector<16x16xf32> to vector<16xf32>
    %88 = vector.shape_cast %87 : vector<16xf32> to vector<16x1xf32>
    %89 = tpu.reciprocal %88 {approx = true} : vector<16x1xf32> -> vector<16x1xf32>
    %90 = vector.broadcast %89 : vector<16x1xf32> to vector<16x16xf32>
    %91 = arith.mulf %86, %90 : vector<16x16xf32>
    %cst_35 = arith.constant dense<0.000000e+00> : vector<16x8xf32>
    %92 = tpu.matmul %91, %79, %cst_35 {dimension_numbers = #tpu.dot_dimension_numbers<[1], [0], [0], [1], [0, 0, 1, 1], [], []>} : vector<16x16xf32>, vector<16x8xf32>, vector<16x8xf32> -> vector<16x8xf32>
    %93 = tpu.concatenate %44, %60, %76, %92 in 1 : vector<16x8xf32>, vector<16x8xf32>, vector<16x8xf32>, vector<16x8xf32> -> vector<16x32xf32>
    %cst_36 = arith.constant dense<0.000000e+00> : vector<16x32xf32>
    %94 = tpu.matmul %93, %11, %cst_36 {dimension_numbers = #tpu.dot_dimension_numbers<[1], [0], [0], [1], [0, 0, 1, 1], [], []>} : vector<16x32xf32>, vector<32x32xf32>, vector<16x32xf32> -> vector<16x32xf32>
    %95 = vector.broadcast %18 : vector<1x32xf32> to vector<16x32xf32>
    %96 = arith.addf %94, %95 : vector<16x32xf32>
    %97 = arith.addf %96, %0 : vector<16x32xf32>
    %cst_37 = arith.constant dense<0.000000e+00> : vector<16xf32>
    %98 = vector.multi_reduction <add>, %97, %cst_37 [1] : vector<16x32xf32> to vector<16xf32>
    %99 = vector.shape_cast %98 : vector<16xf32> to vector<16x1xf32>
    %cst_38 = arith.constant 3.200000e+01 : f32
    %100 = vector.broadcast %cst_38 : f32 to vector<16x1xf32>
    %101 = arith.divf %99, %100 : vector<16x1xf32>
    %102 = vector.broadcast %101 : vector<16x1xf32> to vector<16x32xf32>
    %103 = arith.subf %97, %102 : vector<16x32xf32>
    %104 = arith.mulf %103, %103 : vector<16x32xf32>
    %cst_39 = arith.constant dense<0.000000e+00> : vector<16xf32>
    %105 = vector.multi_reduction <add>, %104, %cst_39 [1] : vector<16x32xf32> to vector<16xf32>
    %106 = vector.shape_cast %105 : vector<16xf32> to vector<16x1xf32>
    %cst_40 = arith.constant 3.200000e+01 : f32
    %107 = vector.broadcast %cst_40 : f32 to vector<16x1xf32>
    %108 = arith.divf %106, %107 : vector<16x1xf32>
    %109 = vector.broadcast %101 : vector<16x1xf32> to vector<16x32xf32>
    %110 = arith.subf %97, %109 : vector<16x32xf32>
    %cst_41 = arith.constant 9.99999974E-6 : f32
    %111 = vector.broadcast %cst_41 : f32 to vector<16x1xf32>
    %112 = arith.addf %108, %111 : vector<16x1xf32>
    %113 = math.rsqrt %112 : vector<16x1xf32>
    %114 = vector.broadcast %113 : vector<16x1xf32> to vector<16x32xf32>
    %115 = arith.mulf %110, %114 : vector<16x32xf32>
    %116 = vector.broadcast %19 : vector<1x32xf32> to vector<16x32xf32>
    %117 = arith.mulf %115, %116 : vector<16x32xf32>
    %118 = vector.broadcast %20 : vector<1x32xf32> to vector<16x32xf32>
    %119 = arith.addf %117, %118 : vector<16x32xf32>
    %cst_42 = arith.constant dense<0.000000e+00> : vector<16x64xf32>
    %120 = tpu.matmul %119, %12, %cst_42 {dimension_numbers = #tpu.dot_dimension_numbers<[1], [0], [0], [1], [0, 0, 1, 1], [], []>} : vector<16x32xf32>, vector<32x64xf32>, vector<16x64xf32> -> vector<16x64xf32>
    %121 = vector.broadcast %23 : vector<1x64xf32> to vector<16x64xf32>
    %122 = arith.addf %120, %121 : vector<16x64xf32>
    %cst_43 = arith.constant 0.000000e+00 : f32
    %123 = vector.broadcast %cst_43 : f32 to vector<16x64xf32>
    %124 = arith.maximumf %122, %123 : vector<16x64xf32>
    %cst_44 = arith.constant dense<0.000000e+00> : vector<16x32xf32>
    %125 = tpu.matmul %124, %14, %cst_44 {dimension_numbers = #tpu.dot_dimension_numbers<[1], [0], [0], [1], [0, 0, 1, 1], [], []>} : vector<16x64xf32>, vector<64x32xf32>, vector<16x32xf32> -> vector<16x32xf32>
    %126 = vector.broadcast %24 : vector<1x32xf32> to vector<16x32xf32>
    %127 = arith.addf %125, %126 : vector<16x32xf32>
    %128 = arith.addf %119, %127 : vector<16x32xf32>
    %cst_45 = arith.constant dense<0.000000e+00> : vector<16xf32>
    %129 = vector.multi_reduction <add>, %128, %cst_45 [1] : vector<16x32xf32> to vector<16xf32>
    %130 = vector.shape_cast %129 : vector<16xf32> to vector<16x1xf32>
    %cst_46 = arith.constant 3.200000e+01 : f32
    %131 = vector.broadcast %cst_46 : f32 to vector<16x1xf32>
    %132 = arith.divf %130, %131 : vector<16x1xf32>
    %133 = vector.broadcast %132 : vector<16x1xf32> to vector<16x32xf32>
    %134 = arith.subf %128, %133 : vector<16x32xf32>
    %135 = arith.mulf %134, %134 : vector<16x32xf32>
    %cst_47 = arith.constant dense<0.000000e+00> : vector<16xf32>
    %136 = vector.multi_reduction <add>, %135, %cst_47 [1] : vector<16x32xf32> to vector<16xf32>
    %137 = vector.shape_cast %136 : vector<16xf32> to vector<16x1xf32>
    %cst_48 = arith.constant 3.200000e+01 : f32
    %138 = vector.broadcast %cst_48 : f32 to vector<16x1xf32>
    %139 = arith.divf %137, %138 : vector<16x1xf32>
    %140 = vector.broadcast %132 : vector<16x1xf32> to vector<16x32xf32>
    %141 = arith.subf %128, %140 : vector<16x32xf32>
    %cst_49 = arith.constant 9.99999974E-6 : f32
    %142 = vector.broadcast %cst_49 : f32 to vector<16x1xf32>
    %143 = arith.addf %139, %142 : vector<16x1xf32>
    %144 = math.rsqrt %143 : vector<16x1xf32>
    %145 = vector.broadcast %144 : vector<16x1xf32> to vector<16x32xf32>
    %146 = arith.mulf %141, %145 : vector<16x32xf32>
    %147 = vector.broadcast %21 : vector<1x32xf32> to vector<16x32xf32>
    %148 = arith.mulf %146, %147 : vector<16x32xf32>
    %149 = vector.broadcast %22 : vector<1x32xf32> to vector<16x32xf32>
    %150 = arith.addf %148, %149 : vector<16x32xf32>
    %cst_50 = arith.constant dense<0.000000e+00> : vector<16x16xf32>
    %151 = tpu.matmul %150, %2, %cst_50 {dimension_numbers = #tpu.dot_dimension_numbers<[1], [0], [0], [1], [0, 0, 1, 1], [], []>} : vector<16x32xf32>, vector<32x16xf32>, vector<16x16xf32> -> vector<16x16xf32>
    %cst_51 = arith.constant 0.000000e+00 : f32
    %152 = vector.broadcast %cst_51 : f32 to vector<16x16xf32>
    %153 = arith.cmpf ogt, %4, %152 : vector<16x16xf32>
    %cst_52 = arith.constant -1.000000e+30 : f32
    %154 = vector.broadcast %cst_52 : f32 to vector<16x16xf32>
    %155 = arith.select %153, %151, %154 : vector<16x16xi1>, vector<16x16xf32>
    %cst_53 = arith.constant dense<0xFF800000> : vector<16xf32>
    %156 = vector.multi_reduction <maximumf>, %155, %cst_53 [1] : vector<16x16xf32> to vector<16xf32>
    %157 = vector.shape_cast %156 : vector<16xf32> to vector<16x1xf32>
    %cst_54 = arith.constant 0.000000e+00 : f32
    %158 = vector.broadcast %cst_54 : f32 to vector<16x1xf32>
    %159 = arith.maximumf %157, %158 : vector<16x1xf32>
    %cst_55 = arith.constant 0.000000e+00 : f32
    %160 = vector.broadcast %cst_55 : f32 to vector<16x16xf32>
    %161 = arith.cmpf ogt, %4, %160 : vector<16x16xf32>
    %162 = vector.shape_cast %159 : vector<16x1xf32> to vector<16x1xf32>
    %163 = vector.broadcast %162 : vector<16x1xf32> to vector<16x16xf32>
    %164 = arith.select %161, %151, %163 : vector<16x16xi1>, vector<16x16xf32>
    %165 = vector.broadcast %159 : vector<16x1xf32> to vector<16x16xf32>
    %166 = arith.subf %164, %165 : vector<16x16xf32>
    %167 = math.exp %166 : vector<16x16xf32>
    %168 = arith.mulf %167, %4 : vector<16x16xf32>
    %cst_56 = arith.constant dense<0.000000e+00> : vector<16xf32>
    %169 = vector.multi_reduction <add>, %168, %cst_56 [1] : vector<16x16xf32> to vector<16xf32>
    %170 = vector.shape_cast %169 : vector<16xf32> to vector<16x1xf32>
    %cst_57 = arith.constant 0.000000e+00 : f32
    %171 = vector.broadcast %cst_57 : f32 to vector<16x1xf32>
    %172 = arith.subf %171, %159 : vector<16x1xf32>
    %173 = math.exp %172 : vector<16x1xf32>
    %cst_58 = arith.constant 1.000000e-10 : f32
    %174 = vector.broadcast %cst_58 : f32 to vector<16x1xf32>
    %175 = arith.mulf %174, %173 : vector<16x1xf32>
    %176 = arith.addf %170, %175 : vector<16x1xf32>
    %177 = tpu.reciprocal %176 {approx = true} : vector<16x1xf32> -> vector<16x1xf32>
    %178 = vector.broadcast %177 : vector<16x1xf32> to vector<16x16xf32>
    %179 = arith.mulf %168, %178 : vector<16x16xf32>
    %cst_59 = arith.constant dense<0.000000e+00> : vector<16x32xf32>
    %180 = tpu.matmul %179, %3, %cst_59 {dimension_numbers = #tpu.dot_dimension_numbers<[1], [0], [0], [1], [0, 0, 1, 1], [], []>} : vector<16x16xf32>, vector<16x32xf32>, vector<16x32xf32> -> vector<16x32xf32>
    %cst_60 = arith.constant dense<0.000000e+00> : vector<16x32xf32>
    %181 = tpu.matmul %150, %6, %cst_60 {dimension_numbers = #tpu.dot_dimension_numbers<[1], [0], [0], [1], [0, 0, 1, 1], [], []>} : vector<16x32xf32>, vector<32x32xf32>, vector<16x32xf32> -> vector<16x32xf32>
    %cst_61 = arith.constant dense<0.000000e+00> : vector<16x32xf32>
    %182 = tpu.matmul %180, %7, %cst_61 {dimension_numbers = #tpu.dot_dimension_numbers<[1], [0], [0], [1], [0, 0, 1, 1], [], []>} : vector<16x32xf32>, vector<32x32xf32>, vector<16x32xf32> -> vector<16x32xf32>
    %183 = arith.addf %181, %182 : vector<16x32xf32>
    %184 = vector.broadcast %25 : vector<1x32xf32> to vector<16x32xf32>
    %185 = arith.addf %183, %184 : vector<16x32xf32>
    %186 = arith.negf %185 : vector<16x32xf32>
    %187 = math.exp %186 : vector<16x32xf32>
    %cst_62 = arith.constant 1.000000e+00 : f32
    %188 = vector.broadcast %cst_62 : f32 to vector<16x32xf32>
    %189 = arith.addf %188, %187 : vector<16x32xf32>
    %190 = arith.divf %188, %189 : vector<16x32xf32>
    %191 = arith.mulf %150, %190 : vector<16x32xf32>
    %cst_63 = arith.constant 1.000000e+00 : f32
    %192 = vector.broadcast %cst_63 : f32 to vector<16x32xf32>
    %193 = arith.subf %192, %190 : vector<16x32xf32>
    %194 = arith.mulf %180, %193 : vector<16x32xf32>
    %195 = arith.addf %191, %194 : vector<16x32xf32>
    %c1 = arith.constant 1 : index
    %c0_64 = arith.constant 0 : index
    %c0_65 = arith.constant 0 : index
    %196 = vector.load %arg5[%c1, %c0_64, %c0_65] : memref<2x32x192xf32, #tpu.memory_space<vmem>>, vector<1x32x192xf32>
    %197 = vector.shape_cast %196 : vector<1x32x192xf32> to vector<32x192xf32>
    %198 = vector.extract_strided_slice %197 {offsets = [0, 0], sizes = [32, 96], strides = [1, 1]} : vector<32x192xf32> to vector<32x96xf32>
    %199 = vector.extract_strided_slice %197 {offsets = [0, 96], sizes = [32, 32], strides = [1, 1]} : vector<32x192xf32> to vector<32x32xf32>
    %200 = vector.extract_strided_slice %197 {offsets = [0, 128], sizes = [32, 64], strides = [1, 1]} : vector<32x192xf32> to vector<32x64xf32>
    %c1_66 = arith.constant 1 : index
    %c0_67 = arith.constant 0 : index
    %c0_68 = arith.constant 0 : index
    %201 = vector.load %arg6[%c1_66, %c0_67, %c0_68] : memref<2x64x32xf32, #tpu.memory_space<vmem>>, vector<1x64x32xf32>
    %202 = vector.shape_cast %201 : vector<1x64x32xf32> to vector<64x32xf32>
    %c1_69 = arith.constant 1 : index
    %c0_70 = arith.constant 0 : index
    %c0_71 = arith.constant 0 : index
    %203 = vector.load %arg7[%c1_69, %c0_70, %c0_71] : memref<2x9x96xf32, #tpu.memory_space<vmem>>, vector<1x9x96xf32>
    %204 = vector.shape_cast %203 : vector<1x9x96xf32> to vector<9x96xf32>
    %205 = vector.extract_strided_slice %204 {offsets = [0, 0], sizes = [1, 96], strides = [1, 1]} : vector<9x96xf32> to vector<1x96xf32>
    %206 = vector.extract_strided_slice %204 {offsets = [1, 0], sizes = [1, 32], strides = [1, 1]} : vector<9x96xf32> to vector<1x32xf32>
    %207 = vector.extract_strided_slice %204 {offsets = [2, 0], sizes = [1, 32], strides = [1, 1]} : vector<9x96xf32> to vector<1x32xf32>
    %208 = vector.extract_strided_slice %204 {offsets = [3, 0], sizes = [1, 32], strides = [1, 1]} : vector<9x96xf32> to vector<1x32xf32>
    %209 = vector.extract_strided_slice %204 {offsets = [4, 0], sizes = [1, 32], strides = [1, 1]} : vector<9x96xf32> to vector<1x32xf32>
    %210 = vector.extract_strided_slice %204 {offsets = [5, 0], sizes = [1, 32], strides = [1, 1]} : vector<9x96xf32> to vector<1x32xf32>
    %211 = vector.extract_strided_slice %204 {offsets = [6, 0], sizes = [1, 64], strides = [1, 1]} : vector<9x96xf32> to vector<1x64xf32>
    %212 = vector.extract_strided_slice %204 {offsets = [7, 0], sizes = [1, 32], strides = [1, 1]} : vector<9x96xf32> to vector<1x32xf32>
    %213 = vector.extract_strided_slice %204 {offsets = [8, 0], sizes = [1, 32], strides = [1, 1]} : vector<9x96xf32> to vector<1x32xf32>
    %cst_72 = arith.constant dense<0.000000e+00> : vector<16x96xf32>
    %214 = tpu.matmul %195, %198, %cst_72 {dimension_numbers = #tpu.dot_dimension_numbers<[1], [0], [0], [1], [0, 0, 1, 1], [], []>} : vector<16x32xf32>, vector<32x96xf32>, vector<16x96xf32> -> vector<16x96xf32>
    %215 = vector.broadcast %205 : vector<1x96xf32> to vector<16x96xf32>
    %216 = arith.addf %214, %215 : vector<16x96xf32>
    %217 = vector.extract_strided_slice %216 {offsets = [0, 0], sizes = [16, 8], strides = [1, 1]} : vector<16x96xf32> to vector<16x8xf32>
    %218 = vector.extract_strided_slice %216 {offsets = [0, 32], sizes = [16, 8], strides = [1, 1]} : vector<16x96xf32> to vector<16x8xf32>
    %219 = vector.extract_strided_slice %216 {offsets = [0, 64], sizes = [16, 8], strides = [1, 1]} : vector<16x96xf32> to vector<16x8xf32>
    %cst_73 = arith.constant dense<0.000000e+00> : vector<16x16xf32>
    %220 = tpu.matmul %217, %218, %cst_73 {dimension_numbers = #tpu.dot_dimension_numbers<[1], [1], [0], [0], [0, 0, 1, 0], [], []>} : vector<16x8xf32>, vector<16x8xf32>, vector<16x16xf32> -> vector<16x16xf32>
    %221 = arith.addf %220, %1 : vector<16x16xf32>
    %cst_74 = arith.constant dense<0xFF800000> : vector<16xf32>
    %222 = vector.multi_reduction <maximumf>, %221, %cst_74 [1] : vector<16x16xf32> to vector<16xf32>
    %223 = vector.shape_cast %222 : vector<16xf32> to vector<16x1xf32>
    %224 = vector.broadcast %223 : vector<16x1xf32> to vector<16x16xf32>
    %225 = arith.subf %221, %224 : vector<16x16xf32>
    %226 = math.exp %225 : vector<16x16xf32>
    %cst_75 = arith.constant dense<0.000000e+00> : vector<16xf32>
    %227 = vector.multi_reduction <add>, %226, %cst_75 [1] : vector<16x16xf32> to vector<16xf32>
    %228 = vector.shape_cast %227 : vector<16xf32> to vector<16x1xf32>
    %229 = tpu.reciprocal %228 {approx = true} : vector<16x1xf32> -> vector<16x1xf32>
    %230 = vector.broadcast %229 : vector<16x1xf32> to vector<16x16xf32>
    %231 = arith.mulf %226, %230 : vector<16x16xf32>
    %cst_76 = arith.constant dense<0.000000e+00> : vector<16x8xf32>
    %232 = tpu.matmul %231, %219, %cst_76 {dimension_numbers = #tpu.dot_dimension_numbers<[1], [0], [0], [1], [0, 0, 1, 1], [], []>} : vector<16x16xf32>, vector<16x8xf32>, vector<16x8xf32> -> vector<16x8xf32>
    %233 = vector.extract_strided_slice %216 {offsets = [0, 8], sizes = [16, 8], strides = [1, 1]} : vector<16x96xf32> to vector<16x8xf32>
    %234 = vector.extract_strided_slice %216 {offsets = [0, 40], sizes = [16, 8], strides = [1, 1]} : vector<16x96xf32> to vector<16x8xf32>
    %235 = vector.extract_strided_slice %216 {offsets = [0, 72], sizes = [16, 8], strides = [1, 1]} : vector<16x96xf32> to vector<16x8xf32>
    %cst_77 = arith.constant dense<0.000000e+00> : vector<16x16xf32>
    %236 = tpu.matmul %233, %234, %cst_77 {dimension_numbers = #tpu.dot_dimension_numbers<[1], [1], [0], [0], [0, 0, 1, 0], [], []>} : vector<16x8xf32>, vector<16x8xf32>, vector<16x16xf32> -> vector<16x16xf32>
    %237 = arith.addf %236, %1 : vector<16x16xf32>
    %cst_78 = arith.constant dense<0xFF800000> : vector<16xf32>
    %238 = vector.multi_reduction <maximumf>, %237, %cst_78 [1] : vector<16x16xf32> to vector<16xf32>
    %239 = vector.shape_cast %238 : vector<16xf32> to vector<16x1xf32>
    %240 = vector.broadcast %239 : vector<16x1xf32> to vector<16x16xf32>
    %241 = arith.subf %237, %240 : vector<16x16xf32>
    %242 = math.exp %241 : vector<16x16xf32>
    %cst_79 = arith.constant dense<0.000000e+00> : vector<16xf32>
    %243 = vector.multi_reduction <add>, %242, %cst_79 [1] : vector<16x16xf32> to vector<16xf32>
    %244 = vector.shape_cast %243 : vector<16xf32> to vector<16x1xf32>
    %245 = tpu.reciprocal %244 {approx = true} : vector<16x1xf32> -> vector<16x1xf32>
    %246 = vector.broadcast %245 : vector<16x1xf32> to vector<16x16xf32>
    %247 = arith.mulf %242, %246 : vector<16x16xf32>
    %cst_80 = arith.constant dense<0.000000e+00> : vector<16x8xf32>
    %248 = tpu.matmul %247, %235, %cst_80 {dimension_numbers = #tpu.dot_dimension_numbers<[1], [0], [0], [1], [0, 0, 1, 1], [], []>} : vector<16x16xf32>, vector<16x8xf32>, vector<16x8xf32> -> vector<16x8xf32>
    %249 = vector.extract_strided_slice %216 {offsets = [0, 16], sizes = [16, 8], strides = [1, 1]} : vector<16x96xf32> to vector<16x8xf32>
    %250 = vector.extract_strided_slice %216 {offsets = [0, 48], sizes = [16, 8], strides = [1, 1]} : vector<16x96xf32> to vector<16x8xf32>
    %251 = vector.extract_strided_slice %216 {offsets = [0, 80], sizes = [16, 8], strides = [1, 1]} : vector<16x96xf32> to vector<16x8xf32>
    %cst_81 = arith.constant dense<0.000000e+00> : vector<16x16xf32>
    %252 = tpu.matmul %249, %250, %cst_81 {dimension_numbers = #tpu.dot_dimension_numbers<[1], [1], [0], [0], [0, 0, 1, 0], [], []>} : vector<16x8xf32>, vector<16x8xf32>, vector<16x16xf32> -> vector<16x16xf32>
    %253 = arith.addf %252, %1 : vector<16x16xf32>
    %cst_82 = arith.constant dense<0xFF800000> : vector<16xf32>
    %254 = vector.multi_reduction <maximumf>, %253, %cst_82 [1] : vector<16x16xf32> to vector<16xf32>
    %255 = vector.shape_cast %254 : vector<16xf32> to vector<16x1xf32>
    %256 = vector.broadcast %255 : vector<16x1xf32> to vector<16x16xf32>
    %257 = arith.subf %253, %256 : vector<16x16xf32>
    %258 = math.exp %257 : vector<16x16xf32>
    %cst_83 = arith.constant dense<0.000000e+00> : vector<16xf32>
    %259 = vector.multi_reduction <add>, %258, %cst_83 [1] : vector<16x16xf32> to vector<16xf32>
    %260 = vector.shape_cast %259 : vector<16xf32> to vector<16x1xf32>
    %261 = tpu.reciprocal %260 {approx = true} : vector<16x1xf32> -> vector<16x1xf32>
    %262 = vector.broadcast %261 : vector<16x1xf32> to vector<16x16xf32>
    %263 = arith.mulf %258, %262 : vector<16x16xf32>
    %cst_84 = arith.constant dense<0.000000e+00> : vector<16x8xf32>
    %264 = tpu.matmul %263, %251, %cst_84 {dimension_numbers = #tpu.dot_dimension_numbers<[1], [0], [0], [1], [0, 0, 1, 1], [], []>} : vector<16x16xf32>, vector<16x8xf32>, vector<16x8xf32> -> vector<16x8xf32>
    %265 = vector.extract_strided_slice %216 {offsets = [0, 24], sizes = [16, 8], strides = [1, 1]} : vector<16x96xf32> to vector<16x8xf32>
    %266 = vector.extract_strided_slice %216 {offsets = [0, 56], sizes = [16, 8], strides = [1, 1]} : vector<16x96xf32> to vector<16x8xf32>
    %267 = vector.extract_strided_slice %216 {offsets = [0, 88], sizes = [16, 8], strides = [1, 1]} : vector<16x96xf32> to vector<16x8xf32>
    %cst_85 = arith.constant dense<0.000000e+00> : vector<16x16xf32>
    %268 = tpu.matmul %265, %266, %cst_85 {dimension_numbers = #tpu.dot_dimension_numbers<[1], [1], [0], [0], [0, 0, 1, 0], [], []>} : vector<16x8xf32>, vector<16x8xf32>, vector<16x16xf32> -> vector<16x16xf32>
    %269 = arith.addf %268, %1 : vector<16x16xf32>
    %cst_86 = arith.constant dense<0xFF800000> : vector<16xf32>
    %270 = vector.multi_reduction <maximumf>, %269, %cst_86 [1] : vector<16x16xf32> to vector<16xf32>
    %271 = vector.shape_cast %270 : vector<16xf32> to vector<16x1xf32>
    %272 = vector.broadcast %271 : vector<16x1xf32> to vector<16x16xf32>
    %273 = arith.subf %269, %272 : vector<16x16xf32>
    %274 = math.exp %273 : vector<16x16xf32>
    %cst_87 = arith.constant dense<0.000000e+00> : vector<16xf32>
    %275 = vector.multi_reduction <add>, %274, %cst_87 [1] : vector<16x16xf32> to vector<16xf32>
    %276 = vector.shape_cast %275 : vector<16xf32> to vector<16x1xf32>
    %277 = tpu.reciprocal %276 {approx = true} : vector<16x1xf32> -> vector<16x1xf32>
    %278 = vector.broadcast %277 : vector<16x1xf32> to vector<16x16xf32>
    %279 = arith.mulf %274, %278 : vector<16x16xf32>
    %cst_88 = arith.constant dense<0.000000e+00> : vector<16x8xf32>
    %280 = tpu.matmul %279, %267, %cst_88 {dimension_numbers = #tpu.dot_dimension_numbers<[1], [0], [0], [1], [0, 0, 1, 1], [], []>} : vector<16x16xf32>, vector<16x8xf32>, vector<16x8xf32> -> vector<16x8xf32>
    %281 = tpu.concatenate %232, %248, %264, %280 in 1 : vector<16x8xf32>, vector<16x8xf32>, vector<16x8xf32>, vector<16x8xf32> -> vector<16x32xf32>
    %cst_89 = arith.constant dense<0.000000e+00> : vector<16x32xf32>
    %282 = tpu.matmul %281, %199, %cst_89 {dimension_numbers = #tpu.dot_dimension_numbers<[1], [0], [0], [1], [0, 0, 1, 1], [], []>} : vector<16x32xf32>, vector<32x32xf32>, vector<16x32xf32> -> vector<16x32xf32>
    %283 = vector.broadcast %206 : vector<1x32xf32> to vector<16x32xf32>
    %284 = arith.addf %282, %283 : vector<16x32xf32>
    %285 = arith.addf %284, %195 : vector<16x32xf32>
    %cst_90 = arith.constant dense<0.000000e+00> : vector<16xf32>
    %286 = vector.multi_reduction <add>, %285, %cst_90 [1] : vector<16x32xf32> to vector<16xf32>
    %287 = vector.shape_cast %286 : vector<16xf32> to vector<16x1xf32>
    %cst_91 = arith.constant 3.200000e+01 : f32
    %288 = vector.broadcast %cst_91 : f32 to vector<16x1xf32>
    %289 = arith.divf %287, %288 : vector<16x1xf32>
    %290 = vector.broadcast %289 : vector<16x1xf32> to vector<16x32xf32>
    %291 = arith.subf %285, %290 : vector<16x32xf32>
    %292 = arith.mulf %291, %291 : vector<16x32xf32>
    %cst_92 = arith.constant dense<0.000000e+00> : vector<16xf32>
    %293 = vector.multi_reduction <add>, %292, %cst_92 [1] : vector<16x32xf32> to vector<16xf32>
    %294 = vector.shape_cast %293 : vector<16xf32> to vector<16x1xf32>
    %cst_93 = arith.constant 3.200000e+01 : f32
    %295 = vector.broadcast %cst_93 : f32 to vector<16x1xf32>
    %296 = arith.divf %294, %295 : vector<16x1xf32>
    %297 = vector.broadcast %289 : vector<16x1xf32> to vector<16x32xf32>
    %298 = arith.subf %285, %297 : vector<16x32xf32>
    %cst_94 = arith.constant 9.99999974E-6 : f32
    %299 = vector.broadcast %cst_94 : f32 to vector<16x1xf32>
    %300 = arith.addf %296, %299 : vector<16x1xf32>
    %301 = math.rsqrt %300 : vector<16x1xf32>
    %302 = vector.broadcast %301 : vector<16x1xf32> to vector<16x32xf32>
    %303 = arith.mulf %298, %302 : vector<16x32xf32>
    %304 = vector.broadcast %207 : vector<1x32xf32> to vector<16x32xf32>
    %305 = arith.mulf %303, %304 : vector<16x32xf32>
    %306 = vector.broadcast %208 : vector<1x32xf32> to vector<16x32xf32>
    %307 = arith.addf %305, %306 : vector<16x32xf32>
    %cst_95 = arith.constant dense<0.000000e+00> : vector<16x64xf32>
    %308 = tpu.matmul %307, %200, %cst_95 {dimension_numbers = #tpu.dot_dimension_numbers<[1], [0], [0], [1], [0, 0, 1, 1], [], []>} : vector<16x32xf32>, vector<32x64xf32>, vector<16x64xf32> -> vector<16x64xf32>
    %309 = vector.broadcast %211 : vector<1x64xf32> to vector<16x64xf32>
    %310 = arith.addf %308, %309 : vector<16x64xf32>
    %cst_96 = arith.constant 0.000000e+00 : f32
    %311 = vector.broadcast %cst_96 : f32 to vector<16x64xf32>
    %312 = arith.maximumf %310, %311 : vector<16x64xf32>
    %cst_97 = arith.constant dense<0.000000e+00> : vector<16x32xf32>
    %313 = tpu.matmul %312, %202, %cst_97 {dimension_numbers = #tpu.dot_dimension_numbers<[1], [0], [0], [1], [0, 0, 1, 1], [], []>} : vector<16x64xf32>, vector<64x32xf32>, vector<16x32xf32> -> vector<16x32xf32>
    %314 = vector.broadcast %212 : vector<1x32xf32> to vector<16x32xf32>
    %315 = arith.addf %313, %314 : vector<16x32xf32>
    %316 = arith.addf %307, %315 : vector<16x32xf32>
    %cst_98 = arith.constant dense<0.000000e+00> : vector<16xf32>
    %317 = vector.multi_reduction <add>, %316, %cst_98 [1] : vector<16x32xf32> to vector<16xf32>
    %318 = vector.shape_cast %317 : vector<16xf32> to vector<16x1xf32>
    %cst_99 = arith.constant 3.200000e+01 : f32
    %319 = vector.broadcast %cst_99 : f32 to vector<16x1xf32>
    %320 = arith.divf %318, %319 : vector<16x1xf32>
    %321 = vector.broadcast %320 : vector<16x1xf32> to vector<16x32xf32>
    %322 = arith.subf %316, %321 : vector<16x32xf32>
    %323 = arith.mulf %322, %322 : vector<16x32xf32>
    %cst_100 = arith.constant dense<0.000000e+00> : vector<16xf32>
    %324 = vector.multi_reduction <add>, %323, %cst_100 [1] : vector<16x32xf32> to vector<16xf32>
    %325 = vector.shape_cast %324 : vector<16xf32> to vector<16x1xf32>
    %cst_101 = arith.constant 3.200000e+01 : f32
    %326 = vector.broadcast %cst_101 : f32 to vector<16x1xf32>
    %327 = arith.divf %325, %326 : vector<16x1xf32>
    %328 = vector.broadcast %320 : vector<16x1xf32> to vector<16x32xf32>
    %329 = arith.subf %316, %328 : vector<16x32xf32>
    %cst_102 = arith.constant 9.99999974E-6 : f32
    %330 = vector.broadcast %cst_102 : f32 to vector<16x1xf32>
    %331 = arith.addf %327, %330 : vector<16x1xf32>
    %332 = math.rsqrt %331 : vector<16x1xf32>
    %333 = vector.broadcast %332 : vector<16x1xf32> to vector<16x32xf32>
    %334 = arith.mulf %329, %333 : vector<16x32xf32>
    %335 = vector.broadcast %209 : vector<1x32xf32> to vector<16x32xf32>
    %336 = arith.mulf %334, %335 : vector<16x32xf32>
    %337 = vector.broadcast %210 : vector<1x32xf32> to vector<16x32xf32>
    %338 = arith.addf %336, %337 : vector<16x32xf32>
    %cst_103 = arith.constant dense<0.000000e+00> : vector<16x16xf32>
    %339 = tpu.matmul %338, %2, %cst_103 {dimension_numbers = #tpu.dot_dimension_numbers<[1], [0], [0], [1], [0, 0, 1, 1], [], []>} : vector<16x32xf32>, vector<32x16xf32>, vector<16x16xf32> -> vector<16x16xf32>
    %cst_104 = arith.constant 0.000000e+00 : f32
    %340 = vector.broadcast %cst_104 : f32 to vector<16x16xf32>
    %341 = arith.cmpf ogt, %4, %340 : vector<16x16xf32>
    %cst_105 = arith.constant -1.000000e+30 : f32
    %342 = vector.broadcast %cst_105 : f32 to vector<16x16xf32>
    %343 = arith.select %341, %339, %342 : vector<16x16xi1>, vector<16x16xf32>
    %cst_106 = arith.constant dense<0xFF800000> : vector<16xf32>
    %344 = vector.multi_reduction <maximumf>, %343, %cst_106 [1] : vector<16x16xf32> to vector<16xf32>
    %345 = vector.shape_cast %344 : vector<16xf32> to vector<16x1xf32>
    %cst_107 = arith.constant 0.000000e+00 : f32
    %346 = vector.broadcast %cst_107 : f32 to vector<16x1xf32>
    %347 = arith.maximumf %345, %346 : vector<16x1xf32>
    %cst_108 = arith.constant 0.000000e+00 : f32
    %348 = vector.broadcast %cst_108 : f32 to vector<16x16xf32>
    %349 = arith.cmpf ogt, %4, %348 : vector<16x16xf32>
    %350 = vector.shape_cast %347 : vector<16x1xf32> to vector<16x1xf32>
    %351 = vector.broadcast %350 : vector<16x1xf32> to vector<16x16xf32>
    %352 = arith.select %349, %339, %351 : vector<16x16xi1>, vector<16x16xf32>
    %353 = vector.broadcast %347 : vector<16x1xf32> to vector<16x16xf32>
    %354 = arith.subf %352, %353 : vector<16x16xf32>
    %355 = math.exp %354 : vector<16x16xf32>
    %356 = arith.mulf %355, %4 : vector<16x16xf32>
    %cst_109 = arith.constant dense<0.000000e+00> : vector<16xf32>
    %357 = vector.multi_reduction <add>, %356, %cst_109 [1] : vector<16x16xf32> to vector<16xf32>
    %358 = vector.shape_cast %357 : vector<16xf32> to vector<16x1xf32>
    %cst_110 = arith.constant 0.000000e+00 : f32
    %359 = vector.broadcast %cst_110 : f32 to vector<16x1xf32>
    %360 = arith.subf %359, %347 : vector<16x1xf32>
    %361 = math.exp %360 : vector<16x1xf32>
    %cst_111 = arith.constant 1.000000e-10 : f32
    %362 = vector.broadcast %cst_111 : f32 to vector<16x1xf32>
    %363 = arith.mulf %362, %361 : vector<16x1xf32>
    %364 = arith.addf %358, %363 : vector<16x1xf32>
    %365 = tpu.reciprocal %364 {approx = true} : vector<16x1xf32> -> vector<16x1xf32>
    %366 = vector.broadcast %365 : vector<16x1xf32> to vector<16x16xf32>
    %367 = arith.mulf %356, %366 : vector<16x16xf32>
    %cst_112 = arith.constant dense<0.000000e+00> : vector<16x32xf32>
    %368 = tpu.matmul %367, %3, %cst_112 {dimension_numbers = #tpu.dot_dimension_numbers<[1], [0], [0], [1], [0, 0, 1, 1], [], []>} : vector<16x16xf32>, vector<16x32xf32>, vector<16x32xf32> -> vector<16x32xf32>
    %cst_113 = arith.constant dense<0.000000e+00> : vector<16x32xf32>
    %369 = tpu.matmul %338, %6, %cst_113 {dimension_numbers = #tpu.dot_dimension_numbers<[1], [0], [0], [1], [0, 0, 1, 1], [], []>} : vector<16x32xf32>, vector<32x32xf32>, vector<16x32xf32> -> vector<16x32xf32>
    %cst_114 = arith.constant dense<0.000000e+00> : vector<16x32xf32>
    %370 = tpu.matmul %368, %7, %cst_114 {dimension_numbers = #tpu.dot_dimension_numbers<[1], [0], [0], [1], [0, 0, 1, 1], [], []>} : vector<16x32xf32>, vector<32x32xf32>, vector<16x32xf32> -> vector<16x32xf32>
    %371 = arith.addf %369, %370 : vector<16x32xf32>
    %372 = vector.broadcast %213 : vector<1x32xf32> to vector<16x32xf32>
    %373 = arith.addf %371, %372 : vector<16x32xf32>
    %374 = arith.negf %373 : vector<16x32xf32>
    %375 = math.exp %374 : vector<16x32xf32>
    %cst_115 = arith.constant 1.000000e+00 : f32
    %376 = vector.broadcast %cst_115 : f32 to vector<16x32xf32>
    %377 = arith.addf %376, %375 : vector<16x32xf32>
    %378 = arith.divf %376, %377 : vector<16x32xf32>
    %379 = arith.mulf %338, %378 : vector<16x32xf32>
    %cst_116 = arith.constant 1.000000e+00 : f32
    %380 = vector.broadcast %cst_116 : f32 to vector<16x32xf32>
    %381 = arith.subf %380, %378 : vector<16x32xf32>
    %382 = arith.mulf %368, %381 : vector<16x32xf32>
    %383 = arith.addf %379, %382 : vector<16x32xf32>
    %c0_117 = arith.constant 0 : index
    %c0_118 = arith.constant 0 : index
    %384 = vector.load %arg9[%c0_117, %c0_118] : memref<16x32xf32, #tpu.memory_space<vmem>>, vector<16x32xf32>
    tpu.vector_store %arg9[%c0_117, %c0_118], %383 {strides = array<i32>} : memref<16x32xf32, #tpu.memory_space<vmem>>, vector<16x32xf32>,
    return
  }
}

</mosaic_0001>

<bundles_post_ra>
// kernel: tpu_custom_call.1
= control target key start
LH: loop header
LB: loop body
LE: loop exit
PB: predicated region body
PF: predicated region fallthrough
CT: control target
= control target key end

     0   :  { %vm71_vm0 = vcmask 261120   ;;  %s5250_s0 = inlined_call_operand.vmem [shape: f32[16,32], index: 0, kind: input, shape index: {}]   ;;  %s5251_s1 = inlined_call_operand.vmem [shape: f32[16,16], index: 1, kind: input, shape index: {}]   ;;  %s5252_s2 = inlined_call_operand.vmem [shape: f32[32,16], index: 2, kind: input, shape index: {}]   ;;  %s5253_s3 = inlined_call_operand.vmem [shape: f32[16,32], index: 3, kind: input, shape index: {}]   ;;  %s5254_s4 = inlined_call_operand.vmem [shape: f32[16,16], index: 4, kind: input, shape index: {}]   ;;  %s5255_s5 = inlined_call_operand.vmem [shape: f32[2,32,192], index: 5, kind: input, shape index: {}]   ;;  %s5256_s6 = inlined_call_operand.vmem [shape: f32[2,64,32], index: 6, kind: input, shape index: {}]   ;;  %s5257_s7 = inlined_call_operand.vmem [shape: f32[2,9,96], index: 7, kind: input, shape index: {}]   ;;  %s5258_s8 = inlined_call_operand.vmem [shape: f32[32,64], index: 8, kind: input, shape index: {}]   ;;  %s5259_s9 = inlined_call_operand.hbm [shape: f32[16,32], index: 9, kind: output, shape index: {}]  }
   0x1   :  { %v4559_v0 = vld [vmem:[%s5255_s5] sm:$0xff]  ;;  %v4564_v1 = vld [vmem:[%s5255_s5 + $0x10] sm:$0xff] }
   0x2   :  { %v4569_v2 = vld [vmem:[%s5255_s5 + $0x20] sm:$0xff]  ;;  %v4271_v3 = vpack.i.bf16 %v4564_v1, %v4559_v0  ;;  %v3994_v4 = vpack.c.bf16 %v4564_v1, %v4559_v0  ;;  %v4578_v5 = vld [vmem:[%s5255_s5 + $0x30] sm:$0xff] }
   0x3   :  { %v4583_v6 = vld [vmem:[%s5250_s0] sm:$0xff]  ;;  %v3998_v7 = vpack.c.bf16 %v4578_v5, %v4569_v2 }
   0x4   :  { %3706 = vmatprep.mubr.msk.f32.mxu1 %vm71_vm0, %v4583_v6 }
   0x5   :  { %14 = vsyncpa [#allocation3], 0  ;;  %3995 = vmatprep.subr.bf16.mxu1 %v3994_v4  ;;  %v4592_v8 = vld [vmem:[%s5250_s0 + $0x8] sm:$0xff]  ;;  %v67_v9 = vlaneseq  ;;  %v4602_v12 = vld [vmem:[%s5257_s7] sm:$0xff]  ;;  %vm159_vm1 = vcmask 64512   ;;  %s4489_s0 = smov 120  }
   0x6   :  { %3997 = vmatpush3.bf16.msra.mxu1 %v3994_v4  ;;  %s4490_s23 = smov 96   ;;  %s4491_s24 = smov 88   ;;  %vm4627_vm2 = vmpackc.low %vm159_vm1, %vm159_vm1  ;;  %v4646_v30 = vld [vmem:[%s5251_s1 + $0x8] sm:$0xff]  ;;  %v4651_v31 = vld [vmem:[%s5251_s1] sm:$0xff]  ;;  %vm243_vm3 = vcmask 130048   ;;  %vm981_vm4 = vcmask 195584  }
   0x7   :  { %3999 = vmatprep.subr.bf16.mxu1 %v3998_v7  ;;  %v4596_v10 = vshrl.u32 %v67_v9, 7  ;;  %s4492_s29 = smov 64   ;;  %s4493_s30 = smov 80   ;;  %vm1217_vm5 = vcmask 523264  }
   0x8   :  { %s4494_s10 = smov 56   ;;  %s4495_s11 = smov 112  }
   0x9   :  { %v69_v11 = vsub.s32 0, %v4596_v10  ;;  %s4496_s12 = smov 72   ;;  %s4497_s13 = smov 104  }
   0xa   :  { %4001 = vmatpush3.bf16.msra.mxu1 %v3998_v7  ;;  %s4498_s14 = smov 48   ;;  %s4499_s15 = smov 32  }
   0xb   :  { %v70_v13 = vrot.slane %v4602_v12, %v69_v11  ;;  %s4500_s16 = smov 40   ;;  %s5264_s17 = smov 8  }
   0xc   :  { %s5262_s18 = smov 16   ;;  %s5260_s19 = smov 24  }
   0xd   :  { %3707 = vmatmul.mubr.msk.f32.vlgmr.msra.gmra.mrb[0].mxu1 %vm71_vm0, %v4592_v8 }
  0xe0   :  { %v3708_v14 = vpop.f32.mrb[0].mxu1 }
  0xe1   :  { %v4607_v15 = vadd.f32 %v3708_v14, %v70_v13  ;;  %v144_v16 = vpop.f32.mrb[1].mxu1 }
  0xe2   :  { %v4609_v17 = vadd.f32 %v144_v16, %v70_v13 }
  0xe4   :  { %353 = vrot.lane.b32.xlu1 %v4609_v17, %s4489_s0  ;;  %3713 = vmatprep.mubr.msk.f32.mxu1 %vm159_vm1, %v4609_v17  ;;  %v4617_v18 = vpack.i.bf16 %v4607_v15, %v4609_v17 }
  0xe6   :  { %4232 = vrot.lane.b32.xlu0 %v4617_v18, %s4490_s23 }
  0xe8   :  { %355 = vrot.lane.b32.xlu1 %v4607_v15, %s4489_s0 }
  0xea   :  { %4237 = vrot.lane.b32.xlu0 %v4617_v18, %s4491_s24 }
 0x156   :  { %v354_v28 = vpop.permute.xlu1 %353 }
 0x158   :  { %v4233_v19 = vpop.permute.xlu0 %4232 }
 0x159   :  { %v4235_v20 = vunpack.i.h.bf16 %v4233_v19  ;;  %v4234_v21 = vunpack.i.l.bf16 %v4233_v19 }
 0x15a   :  { %v356_v29 = vpop.permute.xlu1 %355 }
 0x15b   :  { %v4002_v23 = vpack.c.bf16 %v4235_v20, %v4234_v21 }
 0x15c   :  { %v4238_v24 = vpop.permute.xlu0 %4237 }
 0x15d   :  { %v4240_v25 = vunpack.i.h.bf16 %v4238_v24  ;;  %v4239_v26 = vunpack.i.l.bf16 %v4238_v24  ;;  %4004 = vmatprep.subr.msk.bf16.mxu1 %vm4627_vm2, %v4002_v23 }
 0x15e   :  { %4007 = vmatpush3.bf16.xpose.msk.msra.mxu1 %vm4627_vm2, %v4002_v23 }
 0x15f   :  { %v4012_v27 = vpack.c.bf16 %v4240_v25, %v4239_v26 }
 0x161   :  { %4014 = vmatprep.subr.msk.bf16.mxu1 %vm4627_vm2, %v4012_v27 }
 0x165   :  { %3714 = vmatmul.mubr.msk.f32.vlgmr.msra.gmra.mrb[2].mxu1 %vm159_vm1, %v4607_v15 }
 0x166   :  { %4017 = vmatpush3.bf16.xpose.msk.msra.mxu1 %vm4627_vm2, %v4012_v27  ;;  %3727 = vmatprep.mubr.msk.f32.mxu1 %vm159_vm1, %v354_v28 }
 0x16d   :  { %3728 = vmatmul.mubr.msk.f32.vlgmr.msra.gmra.mrb[4].mxu1 %vm159_vm1, %v356_v29 }
 0x238   :  { %v3715_v32 = vpop.f32.mrb[2].mxu1 }
 0x239   :  { %v240_v33 = vadd.f32 %v3715_v32, %v4646_v30  ;;  %v234_v34 = vpop.f32.mrb[3].mxu1 }
 0x23a   :  { %v235_v35 = vadd.f32 %v234_v34, %v4651_v31 }
 0x23b   :  { %v247_v36 = vsel %vm243_vm3, %v240_v33, -inf }
 0x23c   :  { %248 = vmax.xlane.f32.xlu1 %v247_v36  ;;  %v244_v37 = vsel %vm243_vm3, %v235_v35, -inf }
 0x23d   :  { %245 = vmax.xlane.f32.xlu0 %v244_v37 }
 0x240   :  { %v3729_v38 = vpop.f32.mrb[4].mxu1 }
 0x241   :  { %v435_v39 = vpop.f32.mrb[5].mxu1  ;;  %v441_v41 = vadd.f32 %v3729_v38, %v4646_v30 }
 0x242   :  { %v436_v40 = vadd.f32 %v435_v39, %v4651_v31 }
 0x243   :  { %v447_v43 = vsel %vm243_vm3, %v441_v41, -inf }
 0x244   :  { %v444_v42 = vsel %vm243_vm3, %v436_v40, -inf }
 0x245   :  { %445 = vmax.xlane.f32.xlu0 %v444_v42 }
 0x249   :  { %448 = vmax.xlane.f32.xlu0 %v447_v43 }
 0x24d   :  { %4242 = vrot.lane.b32.xlu1 %v4617_v18, %s4492_s29 }
 0x2c9   :  { %v249_v44 = vpop.xlane.xlu1 %248 }
 0x2ca   :  { %v251_v45 = vsub.f32 %v240_v33, %v249_v44  ;;  %v246_v46 = vpop.xlane.xlu0 %245 }
 0x2cb   :  { %v250_v47 = vsub.f32 %v235_v35, %v246_v46 }
 0x2cc   :  { %v254_v48 = vmul.f32 1.442695, %v251_v45 }
 0x2cd   :  { %v252_v49 = vmul.f32 1.442695, %v250_v47  ;;  %v4243_v50 = vpop.permute.xlu1 %4242 }
 0x2ce   :  { %4341 = vpow2.f32 %v254_v48  ;;  %v4245_v51 = vunpack.i.h.bf16 %v4243_v50  ;;  %v4244_v52 = vunpack.i.l.bf16 %v4243_v50 }
 0x2cf   :  { %4343 = vpow2.f32 %v252_v49 }
 0x2d0   :  { %v4008_v53 = vpack.c.bf16 %v4245_v51, %v4244_v52 }
 0x2d2   :  { %4009 = vmatprep.subr.bf16.mxu0 %v4008_v53  ;;  %v446_v54 = vpop.xlane.xlu0 %445 }
 0x2d3   :  { %4011 = vmatpush3.bf16.msra.mxu0 %v4008_v53  ;;  %v450_v4 = vsub.f32 %v436_v40, %v446_v54 }
 0x2d5   :  { %v452_v7 = vmul.f32 1.442695, %v450_v4 }
 0x2d6   :  { %v449_v55 = vpop.xlane.xlu0 %448 }
 0x2d7   :  { %v451_v56 = vsub.f32 %v441_v41, %v449_v55 }
 0x2d8   :  { %v4342_v57 = vpop.eup %4341 }
 0x2d9   :  { %v4344_v58 = vpop.eup %4343  ;;  %v454_v59 = vmul.f32 1.442695, %v451_v56  ;;  %v259_v60 = vsel %vm243_vm3, %v4342_v57, 0.0 }
 0x2da   :  { %260 = vadd.xlane.f32.xlu0 %v259_v60  ;;  %v256_v61 = vsel %vm243_vm3, %v4344_v58, 0.0 }
 0x2db   :  { %4345 = vpow2.f32 %v454_v59  ;;  %257 = vadd.xlane.f32.xlu1 %v256_v61 }
 0x2dc   :  { %4347 = vpow2.f32 %v452_v7 }
 0x2e5   :  { %v4346_v62 = vpop.eup %4345 }
 0x2e6   :  { %v459_v63 = vsel %vm243_vm3, %v4346_v62, 0.0  ;;  %v4348_v9 = vpop.eup %4347 }
 0x2e7   :  { %460 = vadd.xlane.f32.xlu0 %v459_v63  ;;  %v456_v13 = vsel %vm243_vm3, %v4348_v9, 0.0 }
 0x2ec   :  { %4252 = vrot.lane.b32.xlu1 %v4617_v18, %s4493_s30 }
 0x2fd   :  { %4247 = vrot.lane.b32.xlu0 %v4617_v18, %s4494_s10 }
 0x301   :  { %555 = vrot.lane.b32.xlu0 %v4607_v15, %s4495_s11 }
 0x310   :  { %457 = vadd.xlane.f32.xlu1 %v456_v13 }
 0x321   :  { %553 = vrot.lane.b32.xlu1 %v4609_v17, %s4495_s11 }
 0x367   :  { %v261_v14 = vpop.xlane.xlu0 %260 }
 0x368   :  { %4349 = vrcp.f32 %v261_v14  ;;  %v258_v16 = vpop.xlane.xlu1 %257 }
 0x369   :  { %4351 = vrcp.f32 %v258_v16 }
 0x36c   :  { %v4253_v25 = vpop.permute.xlu1 %4252 }
 0x36d   :  { %v4255_v27 = vunpack.i.h.bf16 %v4253_v25  ;;  %v4254_v28 = vunpack.i.l.bf16 %v4253_v25 }
 0x36f   :  { %v4022_v34 = vpack.c.bf16 %v4255_v27, %v4254_v28 }
 0x372   :  { %v4350_v19 = vpop.eup %4349 }
 0x373   :  { %v4352_v20 = vpop.eup %4351  ;;  %v265_v24 = vmul.f32 %v4350_v19, %v4342_v57 }
 0x374   :  { %v461_v21 = vpop.xlane.xlu0 %460  ;;  %v264_v23 = vmul.f32 %v4352_v20, %v4344_v58 }
 0x375   :  { %4353 = vrcp.f32 %v461_v21 }
 0x376   :  { %3720 = vmatprep.mubr.msk.f32.mxu0 %vm243_vm3, %v264_v23 }
 0x377   :  { %3721 = vmatmul.mubr.msk.f32.vlgmr.msra.gmra.mrb[0].mxu0 %vm243_vm3, %v265_v24 }
 0x378   :  { %v4248_v26 = vpop.permute.xlu0 %4247 }
 0x379   :  { %v4250_v29 = vunpack.i.h.bf16 %v4248_v26  ;;  %v4249_v32 = vunpack.i.l.bf16 %v4248_v26 }
 0x37b   :  { %v4018_v33 = vpack.c.bf16 %v4250_v29, %v4249_v32 }
 0x37c   :  { %v556_v41 = vpop.permute.xlu0 %555 }
 0x37d   :  { %4019 = vmatprep.subr.bf16.mxu0 %v4018_v33 }
 0x37e   :  { %4021 = vmatpush3.bf16.msra.mxu0 %v4018_v33 }
 0x37f   :  { %4024 = vmatprep.subr.msk.bf16.mxu0 %vm4627_vm2, %v4022_v34  ;;  %v4354_v36 = vpop.eup %4353 }
 0x380   :  { %v465_v39 = vmul.f32 %v4354_v36, %v4346_v62 }
 0x39d   :  { %v458_v35 = vpop.xlane.xlu1 %457 }
 0x39e   :  { %4355 = vrcp.f32 %v458_v35 }
 0x3a1   :  { %v554_v40 = vpop.permute.xlu1 %553 }
 0x3a8   :  { %v4356_v37 = vpop.eup %4355 }
 0x3a9   :  { %v464_v38 = vmul.f32 %v4356_v37, %v4348_v9 }
 0x3ab   :  { %3734 = vmatprep.mubr.msk.f32.mxu0 %vm243_vm3, %v464_v38 }
 0x3ac   :  { %3735 = vmatmul.mubr.msk.f32.vlgmr.msra.gmra.mrb[2].mxu0 %vm243_vm3, %v465_v39 }
 0x3ad   :  { %4027 = vmatpush3.bf16.xpose.msk.msra.mxu0 %vm4627_vm2, %v4022_v34  ;;  %3741 = vmatprep.mubr.msk.f32.mxu0 %vm159_vm1, %v554_v40 }
 0x3b4   :  { %3742 = vmatmul.mubr.msk.f32.vlgmr.msra.gmra.mrb[4].mxu0 %vm159_vm1, %v556_v41 }
 0x44a   :  { %v4685_v42 = vpop.f32.mrb[0].mxu0 }
 0x44b   :  { %v4687_v43 = vpop.f32.mrb[1].mxu0 }
 0x47f   :  { %v4689_v44 = vpop.f32.mrb[2].mxu0 }
 0x480   :  { %v4691_v45 = vpop.f32.mrb[3].mxu0 }
 0x487   :  { %v3743_v46 = vpop.f32.mrb[4].mxu0 }
 0x488   :  { %v641_v47 = vadd.f32 %v3743_v46, %v4646_v30  ;;  %v635_v48 = vpop.f32.mrb[5].mxu0 }
 0x489   :  { %v636_v49 = vadd.f32 %v635_v48, %v4651_v31  ;;  %v4276_v48 = vpack.i.bf16 %v4578_v5, %v4569_v2 }
 0x48a   :  { %v647_v50 = vsel %vm243_vm3, %v641_v47, -inf }
 0x48b   :  { %648 = vmax.xlane.f32.xlu0 %v647_v50  ;;  %v644_v51 = vsel %vm243_vm3, %v636_v49, -inf }
 0x48c   :  { %645 = vmax.xlane.f32.xlu1 %v644_v51 }
 0x518   :  { %v649_v52 = vpop.xlane.xlu0 %648 }
 0x519   :  { %v651_v53 = vsub.f32 %v641_v47, %v649_v52  ;;  %v646_v54 = vpop.xlane.xlu1 %645 }
 0x51a   :  { %v650_v55 = vsub.f32 %v636_v49, %v646_v54 }
 0x51b   :  { %v654_v56 = vmul.f32 1.442695, %v651_v53 }
 0x51c   :  { %v652_v57 = vmul.f32 1.442695, %v650_v55 }
 0x51d   :  { %4357 = vpow2.f32 %v654_v56 }
 0x51e   :  { %4359 = vpow2.f32 %v652_v57 }
 0x527   :  { %v4358_v58 = vpop.eup %4357 }
 0x528   :  { %v4360_v59 = vpop.eup %4359  ;;  %v659_v60 = vsel %vm243_vm3, %v4358_v58, 0.0 }
 0x529   :  { %660 = vadd.xlane.f32.xlu1 %v659_v60  ;;  %v656_v61 = vsel %vm243_vm3, %v4360_v59, 0.0 }
 0x52a   :  { %657 = vadd.xlane.f32.xlu0 %v656_v61 }
 0x53a   :  { %4262 = vrot.lane.b32.xlu1 %v4617_v18, %s4496_s12 }
 0x53e   :  { %753 = vrot.lane.b32.xlu1 %v4609_v17, %s4497_s13 }
 0x540   :  { %4257 = vrot.lane.b32.xlu0 %v4617_v18, %s4498_s14 }
 0x544   :  { %755 = vrot.lane.b32.xlu0 %v4607_v15, %s4497_s13 }
 0x5b6   :  { %v661_v62 = vpop.xlane.xlu1 %660 }
 0x5b7   :  { %4361 = vrcp.f32 %v661_v62  ;;  %v658_v63 = vpop.xlane.xlu0 %657 }
 0x5b8   :  { %4363 = vrcp.f32 %v658_v63 }
 0x5ba   :  { %v4263_v4 = vpop.permute.xlu1 %4262 }
 0x5bb   :  { %v4258_v7 = vpop.permute.xlu0 %4257  ;;  %v4265_v9 = vunpack.i.h.bf16 %v4263_v4  ;;  %v4264_v13 = vunpack.i.l.bf16 %v4263_v4 }
 0x5bc   :  { %v4260_v14 = vunpack.i.h.bf16 %v4258_v7  ;;  %v4259_v16 = vunpack.i.l.bf16 %v4258_v7 }
 0x5bd   :  { %v4032_v20 = vpack.c.bf16 %v4265_v9, %v4264_v13 }
 0x5be   :  { %v4028_v19 = vpack.c.bf16 %v4260_v14, %v4259_v16  ;;  %v754_v24 = vpop.permute.xlu1 %753 }
 0x5bf   :  { %v756_v25 = vpop.permute.xlu0 %755 }
 0x5c0   :  { %4029 = vmatprep.subr.bf16.mxu1 %v4028_v19 }
 0x5c1   :  { %v4362_v17 = vpop.eup %4361  ;;  %4031 = vmatpush3.bf16.msra.mxu1 %v4028_v19 }
 0x5c2   :  { %v4364_v21 = vpop.eup %4363  ;;  %4034 = vmatprep.subr.msk.bf16.mxu1 %vm4627_vm2, %v4032_v20  ;;  %v665_v23 = vmul.f32 %v4362_v17, %v4358_v58 }
 0x5c3   :  { %v664_v15 = vmul.f32 %v4364_v21, %v4360_v59  ;;  %v986_v21 = vsub.s32 1, %v4596_v10 }
 0x5c5   :  { %3748 = vmatprep.mubr.msk.f32.mxu1 %vm243_vm3, %v664_v15 }
 0x5c6   :  { %3749 = vmatmul.mubr.msk.f32.vlgmr.msra.gmra.mrb[6].mxu1 %vm243_vm3, %v665_v23 }
 0x5c7   :  { %3755 = vmatprep.mubr.msk.f32.mxu1 %vm159_vm1, %v754_v24 }
 0x5ca   :  { %4037 = vmatpush3.bf16.xpose.msk.msra.mxu1 %vm4627_vm2, %v4032_v20 }
 0x5d1   :  { %3756 = vmatmul.mubr.msk.f32.vlgmr.msra.gmra.mrb[8].mxu1 %vm159_vm1, %v756_v25 }
 0x699   :  { %v3750_v26 = vpop.f32.mrb[6].mxu1 }
 0x69a   :  { %v744_v27 = vpop.f32.mrb[7].mxu1 }
 0x6a4   :  { %v3757_v28 = vpop.f32.mrb[8].mxu1 }
 0x6a5   :  { %v841_v29 = vadd.f32 %v3757_v28, %v4646_v30  ;;  %v835_v32 = vpop.f32.mrb[9].mxu1 }
 0x6a6   :  { %v836_v33 = vadd.f32 %v835_v32, %v4651_v31 }
 0x6a7   :  { %v847_v34 = vsel %vm243_vm3, %v841_v29, -inf }
 0x6a8   :  { %848 = vmax.xlane.f32.xlu0 %v847_v34  ;;  %v844_v35 = vsel %vm243_vm3, %v836_v33, -inf }
 0x6a9   :  { %845 = vmax.xlane.f32.xlu1 %v844_v35 }
 0x735   :  { %v849_v36 = vpop.xlane.xlu0 %848 }
 0x736   :  { %v851_v37 = vsub.f32 %v841_v29, %v849_v36  ;;  %v846_v38 = vpop.xlane.xlu1 %845 }
 0x737   :  { %v850_v39 = vsub.f32 %v836_v33, %v846_v38 }
 0x738   :  { %v854_v40 = vmul.f32 1.442695, %v851_v37 }
 0x739   :  { %v852_v41 = vmul.f32 1.442695, %v850_v39 }
 0x73a   :  { %4365 = vpow2.f32 %v854_v40  ;;  %v52_v40 = vld [vmem:[%s5255_s5 + $0x18] sm:$0xff] }
 0x73b   :  { %4367 = vpow2.f32 %v852_v41 }
 0x744   :  { %v4366_v46 = vpop.eup %4365 }
 0x745   :  { %v4368_v47 = vpop.eup %4367  ;;  %v859_v30 = vsel %vm243_vm3, %v4366_v46, 0.0 }
 0x746   :  { %860 = vadd.xlane.f32.xlu1 %v859_v30  ;;  %v856_v31 = vsel %vm243_vm3, %v4368_v47, 0.0 }
 0x747   :  { %857 = vadd.xlane.f32.xlu0 %v856_v31  ;;  %v57_v31 = vld [vmem:[%s5256_s6] sm:$0xff] }
 0x757   :  { %4272 = vrot.lane.b32.xlu1 %v4271_v3, %s4499_s15 }
 0x75b   :  { %4277 = vrot.lane.b32.xlu1 %v4276_v48, %s4499_s15  ;;  %v58_v48 = vld [vmem:[%s5256_s6 + $0x8] sm:$0xff] }
 0x75d   :  { %4267 = vrot.lane.b32.xlu0 %v4617_v18, %s4500_s16 }
 0x75f   :  { %957 = vrot.lane.b32.xlu1 %v4689_v44, %s5264_s17 }
 0x761   :  { %955 = vrot.lane.b32.xlu0 %v4691_v45, %s5264_s17 }
 0x763   :  { %965 = vrot.lane.b32.xlu1 %v3750_v26, %s5262_s18 }
 0x765   :  { %963 = vrot.lane.b32.xlu0 %v744_v27, %s5262_s18 }
 0x7d3   :  { %v861_v0 = vpop.xlane.xlu1 %860 }
 0x7d4   :  { %4369 = vrcp.f32 %v861_v0  ;;  %v858_v1 = vpop.xlane.xlu0 %857  ;;  %v59_v0 = vld [vmem:[%s5256_s6 + $0x10] sm:$0xff] }
 0x7d5   :  { %4371 = vrcp.f32 %v858_v1  ;;  %v4058_v1 = vpack.c.bf16 %v58_v48, %v57_v31  ;;  %v38_v31 = vld [vmem:[%s5252_s2 + $0x8] sm:$0xff] }
 0x7d7   :  { %v4273_v2 = vpop.permute.xlu1 %4272 }
 0x7d8   :  { %v4275_v3 = vunpack.i.h.bf16 %v4273_v2  ;;  %v4274_v5 = vunpack.i.l.bf16 %v4273_v2  ;;  %v4268_v18 = vpop.permute.xlu0 %4267  ;;  %v60_v2 = vld [vmem:[%s5256_s6 + $0x18] sm:$0xff] }
 0x7d9   :  { %v4270_v49 = vunpack.i.h.bf16 %v4268_v18  ;;  %v4269_v50 = vunpack.i.l.bf16 %v4268_v18  ;;  %v62_v18 = vld [vmem:[%s5256_s6 + $0x28] sm:$0xff] }
 0x7da   :  { %v4042_v51 = vpack.c.bf16 %v4275_v3, %v4274_v5  ;;  %v4062_v3 = vpack.c.bf16 %v60_v2, %v59_v0  ;;  %v61_v5 = vld [vmem:[%s5256_s6 + $0x20] sm:$0xff]  ;;  %v39_v0 = vld [vmem:[%s5252_s2 + $0x10] sm:$0xff] }
 0x7db   :  { %v4038_v44 = vpack.c.bf16 %v4270_v49, %v4269_v50  ;;  %v4278_v52 = vpop.permute.xlu1 %4277  ;;  %v4066_v49 = vpack.c.bf16 %v62_v18, %v61_v5 }
 0x7dc   :  { %v4280_v53 = vunpack.i.h.bf16 %v4278_v52  ;;  %v4279_v45 = vunpack.i.l.bf16 %v4278_v52  ;;  %v956_v62 = vpop.permute.xlu0 %955 }
 0x7dd   :  { %4039 = vmatprep.subr.bf16.mxu0 %v4038_v44  ;;  %v977_v7 = vsel %vm159_vm1, %v4687_v43, %v956_v62  ;;  %v987_v43 = vrot.slane %v4602_v12, %v986_v21 }
 0x7de   :  { %v4370_v54 = vpop.eup %4369  ;;  %4041 = vmatpush3.bf16.msra.mxu0 %v4038_v44  ;;  %v4046_v58 = vpack.c.bf16 %v4280_v53, %v4279_v45 }
 0x7df   :  { %v4372_v55 = vpop.eup %4371  ;;  %4043 = vmatprep.subr.bf16.mxu0 %v4042_v51  ;;  %v865_v57 = vmul.f32 %v4370_v54, %v4366_v46  ;;  %v958_v61 = vpop.permute.xlu1 %957  ;;  %v54_v46 = vld [vmem:[%s5255_s5 + $0x28] sm:$0xff]  ;;  %v1116_v54 = vsub.s32 2, %v4596_v10 }
 0x7e0   :  { %v864_v56 = vmul.f32 %v4372_v55, %v4368_v47  ;;  %v964_v4 = vpop.permute.xlu0 %963  ;;  %v978_v13 = vsel %vm159_vm1, %v4685_v42, %v958_v61  ;;  %v56_v47 = vld [vmem:[%s5255_s5 + $0x38] sm:$0xff]  ;;  %v1122_v55 = vsub.s32 3, %v4596_v10 }
 0x7e1   :  { %v979_v14 = vsel %vm243_vm3, %v977_v7, %v964_v4  ;;  %v4054_v30 = vpack.c.bf16 %v56_v47, %v54_v46 }
 0x7e2   :  { %3762 = vmatprep.mubr.msk.f32.mxu0 %vm243_vm3, %v864_v56  ;;  %v1117_v56 = vrot.slane %v4602_v12, %v1116_v54 }
 0x7e3   :  { %3763 = vmatmul.mubr.msk.f32.vlgmr.msra.gmra.mrb[6].mxu0 %vm243_vm3, %v865_v57  ;;  %v966_v63 = vpop.permute.xlu1 %965 }
 0x7e4   :  { %4045 = vmatpush3.bf16.msra.mxu0 %v4042_v51  ;;  %v980_v19 = vsel %vm243_vm3, %v978_v13, %v966_v63  ;;  %v64_v13 = vld [vmem:[%s5256_s6 + $0x38] sm:$0xff] }
 0x7e5   :  { %4047 = vmatprep.subr.bf16.mxu0 %v4046_v58 }
 0x7e8   :  { %4049 = vmatpush3.bf16.msra.mxu0 %v4046_v58 }
 0x7e9   :  { %4059 = vmatprep.subr.bf16.mxu0 %v4058_v1 }
 0x8b6   :  { %v3764_v59 = vpop.f32.mrb[6].mxu0 }
 0x8b7   :  { %973 = vrot.lane.b32.xlu1 %v3764_v59, %s5260_s19  ;;  %v944_v60 = vpop.f32.mrb[7].mxu0  ;;  %v1123_v59 = vrot.slane %v4602_v12, %v1122_v55 }
 0x8b8   :  { %971 = vrot.lane.b32.xlu0 %v944_v60, %s5260_s19 }
 0x929   :  { %v974_v9 = vpop.permute.xlu1 %973 }
 0x92a   :  { %v972_v16 = vpop.permute.xlu0 %971  ;;  %v983_v17 = vsel %vm981_vm4, %v980_v19, %v974_v9  ;;  %v63_v9 = vld [vmem:[%s5256_s6 + $0x30] sm:$0xff] }
 0x92b   :  { %v982_v20 = vsel %vm981_vm4, %v979_v14, %v972_v16  ;;  %v4070_v14 = vpack.c.bf16 %v64_v13, %v63_v9  ;;  %v1128_v16 = vsub.s32 6, %v4596_v10 }
 0x92c   :  { %3773 = vmatprep.mubr.msk.f32.mxu0 %vm71_vm0, %v982_v20 }
 0x92d   :  { %3774 = vmatmul.mubr.msk.f32.vlgmr.msra.gmra.mrb[8].mxu0 %vm71_vm0, %v983_v17  ;;  %v1129_v19 = vrot.slane %v4602_v12, %v1128_v16 }
 0x92e   :  { %4061 = vmatpush3.bf16.msra.mxu0 %v4058_v1  ;;  %v40_v1 = vld [vmem:[%s5252_s2 + $0x18] sm:$0xff] }
 0x92f   :  { %4063 = vmatprep.subr.bf16.mxu0 %v4062_v3  ;;  %v4835_v2 = vpack.c.bf16 %v40_v1, %v39_v0 }
 0x932   :  { %4065 = vmatpush3.bf16.msra.mxu0 %v4062_v3 }
 0x933   :  { %4067 = vmatprep.subr.bf16.mxu0 %v4066_v49 }
 0x936   :  { %4069 = vmatpush3.bf16.msra.mxu0 %v4066_v49 }
 0x937   :  { %4071 = vmatprep.subr.bf16.mxu0 %v4070_v14 }
 0x93a   :  { %4073 = vmatpush3.bf16.msra.mxu0 %v4070_v14 }
 0xa00   :  { %v3775_v42 = vpop.f32.mrb[8].mxu0 }
 0xa01   :  { %v1082_v15 = vadd.f32 %v3775_v42, %v987_v43  ;;  %v1076_v23 = vpop.f32.mrb[9].mxu0 }
 0xa02   :  { %v1077_v24 = vadd.f32 %v1076_v23, %v987_v43 }
 0xa03   :  { %v1086_v25 = vadd.f32 %v1082_v15, %v4592_v8 }
 0xa04   :  { %v1085_v26 = vadd.f32 %v1077_v24, %v4583_v6  ;;  %v50_v6 = vld [vmem:[%s5255_s5 + $0x8] sm:$0xff]  ;;  %v1215_v24 = vsub.s32 7, %v4596_v10 }
 0xa05   :  { %v1090_v27 = vsel %vm71_vm0, %v1086_v25, 0.0  ;;  %v4050_v41 = vpack.c.bf16 %v52_v40, %v50_v6 }
 0xa06   :  { %1091 = vadd.xlane.f32.xlu1 %v1090_v27  ;;  %v1087_v28 = vsel %vm71_vm0, %v1085_v26, 0.0 }
 0xa07   :  { %1088 = vadd.xlane.f32.xlu0 %v1087_v28  ;;  %4051 = vmatprep.subr.bf16.mxu1 %v4050_v41 }
 0xa08   :  { %4053 = vmatpush3.bf16.msra.mxu1 %v4050_v41 }
 0xa09   :  { %4055 = vmatprep.subr.bf16.mxu1 %v4054_v30 }
 0xa0c   :  { %4057 = vmatpush3.bf16.msra.mxu1 %v4054_v30  ;;  %v37_v30 = vld [vmem:[%s5252_s2] sm:$0xff] }
 0xa0d   :  { %v4826_v48 = vpack.c.bf16 %v38_v31, %v37_v30  ;;  %v48_v30 = vld [vmem:[%s5258_s8 + $0x18] sm:$0xff] }
 0xa0f   :  { %4075 = vmatprep.subr.bf16.mxu1 %v4826_v48 }
 0xa93   :  { %v1092_v29 = vpop.xlane.xlu1 %1091 }
 0xa94   :  { %v1095_v32 = vmul.f32 0.03125, %v1092_v29  ;;  %v1089_v33 = vpop.xlane.xlu0 %1088 }
 0xa95   :  { %v1094_v34 = vmul.f32 0.03125, %v1089_v33 }
 0xa96   :  { %v1097_v35 = vsub.f32 %v1086_v25, %v1095_v32  ;;  %v1216_v25 = vrot.slane %v4602_v12, %v1215_v24 }
 0xa97   :  { %v1096_v36 = vsub.f32 %v1085_v26, %v1094_v34 }
 0xa98   :  { %v1099_v39 = vmul.f32 %v1097_v35, %v1097_v35 }
 0xa99   :  { %v1098_v37 = vmul.f32 %v1096_v36, %v1096_v36 }
 0xa9a   :  { %v1103_v8 = vsel %vm71_vm0, %v1099_v39, 0.0 }
 0xa9b   :  { %v1100_v38 = vsel %vm71_vm0, %v1098_v37, 0.0 }
 0xa9c   :  { %1101 = vadd.xlane.f32.xlu0 %v1100_v38 }
 0xaa0   :  { %1104 = vadd.xlane.f32.xlu0 %v1103_v8 }
 0xb29   :  { %v1102_v50 = vpop.xlane.xlu0 %1101 }
 0xb2a   :  { %v1106_v51 = vmul.f32 0.03125, %v1102_v50 }
 0xb2c   :  { %v1108_v44 = vadd.f32 1e-05, %v1106_v51 }
 0xb2d   :  { %v1105_v52 = vpop.xlane.xlu0 %1104 }
 0xb2e   :  { %4373 = vrsqrt.f32 %v1108_v44  ;;  %v1107_v53 = vmul.f32 0.03125, %v1105_v52  ;;  %v1329_v44 = vsub.s32 4, %v4596_v10  ;;  %v1335_v52 = vsub.s32 5, %v4596_v10 }
 0xb30   :  { %v1109_v45 = vadd.f32 1e-05, %v1107_v53  ;;  %v1330_v53 = vrot.slane %v4602_v12, %v1329_v44 }
 0xb32   :  { %4375 = vrsqrt.f32 %v1109_v45 }
 0xb38   :  { %v4374_v57 = vpop.eup %4373 }
 0xb39   :  { %v1112_v58 = vmul.f32 %v4374_v57, %v1096_v36 }
 0xb3b   :  { %v1118_v60 = vmul.f32 %v1117_v56, %v1112_v58 }
 0xb3c   :  { %v4376_v61 = vpop.eup %4375 }
 0xb3d   :  { %v1113_v62 = vmul.f32 %v4376_v61, %v1097_v35  ;;  %v1124_v63 = vadd.f32 %v1123_v59, %v1118_v60 }
 0xb3f   :  { %v1119_v4 = vmul.f32 %v1117_v56, %v1113_v62  ;;  %3784 = vmatprep.mubr.msk.f32.mxu1 %vm71_vm0, %v1124_v63 }
 0xb41   :  { %v1125_v7 = vadd.f32 %v1123_v59, %v1119_v4  ;;  %v1336_v59 = vrot.slane %v4602_v12, %v1335_v52  ;;  %v4859_v4 = vld [vmem:[%s5254_s4 + $0x8] sm:$0xff]  ;;  %v4864_v12 = vld [vmem:[%s5254_s4] sm:$0xff] }
 0xb42   :  { %vm1421_vm6 = vcmp.gt.f32.partialorder %v4859_v4, 0.0  ;;  %vm1420_vm7 = vcmp.gt.f32.partialorder %v4864_v12, 0.0 }
 0xb43   :  { %3785 = vmatmul.mubr.msk.f32.vlgmr.msra.gmra.mrb[10].mxu1 %vm71_vm0, %v1125_v7 }
 0xb44   :  { %4077 = vmatpush3.bf16.msra.mxu1 %v4826_v48 }
 0xb45   :  { %4079 = vmatprep.subr.bf16.mxu1 %v4835_v2 }
 0xb48   :  { %4081 = vmatpush3.bf16.msra.mxu1 %v4835_v2 }
 0xc16   :  { %v3786_v20 = vpop.f32.mrb[10].mxu1 }
 0xc17   :  { %v1208_v17 = vadd.f32 %v3786_v20, %v1129_v19  ;;  %v1202_v43 = vpop.f32.mrb[11].mxu1 }
 0xc18   :  { %v1203_v42 = vadd.f32 %v1202_v43, %v1129_v19 }
 0xc19   :  { %v1212_v23 = vmax.f32 %v1208_v17, 0.0 }
 0xc1a   :  { %v1211_v15 = vmax.f32 %v1203_v42, 0.0 }
 0xc1c   :  { %3803 = vmatprep.mubr.msk.f32.mxu0 %vm1217_vm5, %v1211_v15 }
 0xc1d   :  { %3804 = vmatmul.mubr.msk.f32.vlgmr.msra.gmra.mrb[10].mxu0 %vm1217_vm5, %v1212_v23 }
 0xcf0   :  { %v3805_v26 = vpop.f32.mrb[10].mxu0 }
 0xcf1   :  { %v1296_v27 = vadd.f32 %v3805_v26, %v1216_v25  ;;  %v1290_v28 = vpop.f32.mrb[11].mxu0 }
 0xcf2   :  { %v1291_v29 = vadd.f32 %v1290_v28, %v1216_v25 }
 0xcf3   :  { %v1300_v32 = vadd.f32 %v1296_v27, %v1125_v7 }
 0xcf4   :  { %v1299_v33 = vadd.f32 %v1291_v29, %v1124_v63 }
 0xcf5   :  { %v1304_v34 = vsel %vm71_vm0, %v1300_v32, 0.0 }
 0xcf6   :  { %1305 = vadd.xlane.f32.xlu0 %v1304_v34  ;;  %v1301_v35 = vsel %vm71_vm0, %v1299_v33, 0.0 }
 0xcf7   :  { %1302 = vadd.xlane.f32.xlu1 %v1301_v35 }
 0xd83   :  { %v1306_v36 = vpop.xlane.xlu0 %1305 }
 0xd84   :  { %v1308_v37 = vmul.f32 0.03125, %v1306_v36  ;;  %v1303_v38 = vpop.xlane.xlu1 %1302 }
 0xd85   :  { %v1307_v39 = vmul.f32 0.03125, %v1303_v38  ;;  %v41_v38 = vld [vmem:[%s5253_s3] sm:$0xff] }
 0xd86   :  { %v1310_v8 = vsub.f32 %v1300_v32, %v1308_v37 }
 0xd87   :  { %v1309_v6 = vsub.f32 %v1299_v33, %v1307_v39  ;;  %v42_v39 = vld [vmem:[%s5253_s3 + $0x8] sm:$0xff] }
 0xd88   :  { %v1312_v40 = vmul.f32 %v1310_v8, %v1310_v8 }
 0xd89   :  { %v1311_v41 = vmul.f32 %v1309_v6, %v1309_v6 }
 0xd8a   :  { %v1316_v46 = vsel %vm71_vm0, %v1312_v40, 0.0  ;;  %v46_v40 = vld [vmem:[%s5258_s8 + $0x8] sm:$0xff] }
 0xd8b   :  { %1317 = vadd.xlane.f32.xlu0 %v1316_v46  ;;  %v1313_v47 = vsel %vm71_vm0, %v1311_v41, 0.0  ;;  %v47_v41 = vld [vmem:[%s5258_s8 + $0x10] sm:$0xff] }
 0xd8c   :  { %1314 = vadd.xlane.f32.xlu1 %v1313_v47  ;;  %v4286_v31 = vpack.i.bf16 %v48_v30, %v47_v41  ;;  %v4906_v0 = vpack.c.bf16 %v48_v30, %v47_v41 }
 0xe18   :  { %v1318_v3 = vpop.xlane.xlu0 %1317 }
 0xe19   :  { %v1320_v5 = vmul.f32 0.03125, %v1318_v3  ;;  %v1315_v18 = vpop.xlane.xlu1 %1314 }
 0xe1a   :  { %v1319_v49 = vmul.f32 0.03125, %v1315_v18 }
 0xe1b   :  { %v1322_v50 = vadd.f32 1e-05, %v1320_v5 }
 0xe1c   :  { %v1321_v51 = vadd.f32 1e-05, %v1319_v49 }
 0xe1d   :  { %4377 = vrsqrt.f32 %v1322_v50 }
 0xe1e   :  { %4379 = vrsqrt.f32 %v1321_v51 }
 0xe27   :  { %v4378_v45 = vpop.eup %4377 }
 0xe28   :  { %v4380_v56 = vpop.eup %4379  ;;  %v1326_v57 = vmul.f32 %v4378_v45, %v1310_v8  ;;  %v4888_v8 = vpack.c.bf16 %v42_v39, %v41_v38 }
 0xe29   :  { %v1325_v58 = vmul.f32 %v4380_v56, %v1309_v6  ;;  %v45_v6 = vld [vmem:[%s5258_s8] sm:$0xff] }
 0xe2a   :  { %v1332_v60 = vmul.f32 %v1330_v53, %v1326_v57  ;;  %4083 = vmatprep.subr.bf16.mxu1 %v4888_v8  ;;  %v4281_v46 = vpack.i.bf16 %v46_v40, %v45_v6  ;;  %v4901_v47 = vpack.c.bf16 %v46_v40, %v45_v6 }
 0xe2b   :  { %v1331_v61 = vmul.f32 %v1330_v53, %v1325_v58 }
 0xe2c   :  { %v4850_v63 = vadd.f32 %v1336_v59, %v1332_v60 }
 0xe2d   :  { %v4848_v62 = vadd.f32 %v1336_v59, %v1331_v61 }
 0xe2f   :  { %3814 = vmatprep.mubr.msk.f32.mxu1 %vm71_vm0, %v4848_v62 }
 0xe30   :  { %3815 = vmatmul.mubr.msk.f32.vlgmr.msra.gmra.mrb[12].mxu1 %vm71_vm0, %v4850_v63 }
 0xe31   :  { %4085 = vmatpush3.bf16.msra.mxu1 %v4888_v8 }
 0xf03   :  { %v3816_v7 = vpop.f32.mrb[12].mxu1 }
 0xf04   :  { %v1411_v9 = vpop.f32.mrb[13].mxu1  ;;  %v1423_v13 = vsel %vm1421_vm6, %v3816_v7, -1e+30 }
 0xf05   :  { %v1427_v14 = vsel %vm243_vm3, %v1423_v13, -inf  ;;  %v1422_v19 = vsel %vm1420_vm7, %v1411_v9, -1e+30 }
 0xf06   :  { %1428 = vmax.xlane.f32.xlu0 %v1427_v14  ;;  %v1424_v20 = vsel %vm243_vm3, %v1422_v19, -inf }
 0xf07   :  { %1425 = vmax.xlane.f32.xlu1 %v1424_v20 }
 0xf93   :  { %v1429_v17 = vpop.xlane.xlu0 %1428 }
 0xf94   :  { %v1431_v43 = vmax.f32 %v1429_v17, 0.0  ;;  %v1426_v42 = vpop.xlane.xlu1 %1425 }
 0xf95   :  { %v1430_v15 = vmax.f32 %v1426_v42, 0.0 }
 0xf96   :  { %v1433_v23 = vsel %vm1421_vm6, %v3816_v7, %v1431_v43  ;;  %v1449_v1 = vsub.f32 0.0, %v1431_v43 }
 0xf97   :  { %v1435_v25 = vsub.f32 %v1433_v23, %v1431_v43  ;;  %v1432_v26 = vsel %vm1420_vm7, %v1411_v9, %v1430_v15  ;;  %v1448_v3 = vsub.f32 0.0, %v1430_v15 }
 0xf98   :  { %v1434_v27 = vsub.f32 %v1432_v26, %v1430_v15  ;;  %v1452_v5 = vmul.f32 1.442695, %v1449_v1  ;;  %v4938_v26 = vld [vmem:[%s5255_s5 + $0x50] sm:$0xff] }
 0xf99   :  { %v1438_v28 = vmul.f32 1.442695, %v1435_v25  ;;  %v1450_v18 = vmul.f32 1.442695, %v1448_v3  ;;  %v4933_v25 = vld [vmem:[%s5255_s5 + $0x40] sm:$0xff] }
 0xf9a   :  { %v1436_v29 = vmul.f32 1.442695, %v1434_v27  ;;  %v4102_v27 = vpack.c.bf16 %v4938_v26, %v4933_v25 }
 0xf9b   :  { %4381 = vpow2.f32 %v1438_v28  ;;  %v4945_v28 = vld [vmem:[%s5255_s5 + $0x60] sm:$0xff] }
 0xf9c   :  { %4383 = vpow2.f32 %v1436_v29  ;;  %v4950_v29 = vld [vmem:[%s5255_s5 + $0x70] sm:$0xff]  ;;  %4103 = vmatprep.subr.bf16.mxu0 %v4102_v27 }
 0xf9d   :  { %4385 = vpow2.f32 %v1452_v5  ;;  %4105 = vmatpush3.bf16.msra.mxu0 %v4102_v27 }
 0xf9e   :  { %4387 = vpow2.f32 %v1450_v18 }
 0xfa5   :  { %v4382_v32 = vpop.eup %4381 }
 0xfa6   :  { %v4384_v33 = vpop.eup %4383  ;;  %v1441_v34 = vmul.f32 %v4382_v32, %v4859_v4  ;;  %v4106_v32 = vpack.c.bf16 %v4950_v29, %v4945_v28  ;;  %v4464_v4 = vld [vmem:[%s5254_s4] sm:$0xff] }
 0xfa7   :  { %v1440_v35 = vmul.f32 %v4384_v33, %v4864_v12  ;;  %v4386_v49 = vpop.eup %4385  ;;  %v3470_v33 = vld [vmem:[%s5257_s7 + $0x8] ss:$0 sm:$0xff] }
 0xfa8   :  { %v1445_v36 = vsel %vm243_vm3, %v1441_v34, 0.0  ;;  %v4388_v50 = vpop.eup %4387  ;;  %v1455_v51 = vmul.f32 1e-10, %v4386_v49  ;;  %4107 = vmatprep.subr.bf16.mxu0 %v4106_v32 }
 0xfa9   :  { %1446 = vadd.xlane.f32.xlu0 %v1445_v36  ;;  %v1442_v37 = vsel %vm243_vm3, %v1440_v35, 0.0  ;;  %v1454_v45 = vmul.f32 1e-10, %v4388_v50  ;;  %4109 = vmatpush3.bf16.msra.mxu0 %v4106_v32 }
 0xfaa   :  { %1443 = vadd.xlane.f32.xlu1 %v1442_v37 }
 0xfbb   :  { %4282 = vrot.lane.b32.xlu1 %v4281_v46, %s4490_s23 }
 0xfbf   :  { %4287 = vrot.lane.b32.xlu0 %v4286_v31, %s4490_s23 }
0x1036   :  { %v1447_v53 = vpop.xlane.xlu0 %1446 }
0x1037   :  { %v1457_v56 = vadd.f32 %v1455_v51, %v1447_v53  ;;  %v1444_v57 = vpop.xlane.xlu1 %1443 }
0x1038   :  { %v1456_v58 = vadd.f32 %v1454_v45, %v1444_v57  ;;  %v4970_v45 = vld [vmem:[%s5257_s7 + $0x10] sm:$0xff] }
0x1039   :  { %4389 = vrcp.f32 %v1457_v56 }
0x103a   :  { %4391 = vrcp.f32 %v1456_v58  ;;  %v4288_v7 = vpop.permute.xlu0 %4287 }
0x103b   :  { %v4283_v59 = vpop.permute.xlu1 %4282  ;;  %v4290_v13 = vunpack.i.h.bf16 %v4288_v7  ;;  %v4289_v14 = vunpack.i.l.bf16 %v4288_v7 }
0x103c   :  { %v4285_v60 = vunpack.i.h.bf16 %v4283_v59  ;;  %v4284_v61 = vunpack.i.l.bf16 %v4283_v59 }
0x103d   :  { %v4913_v42 = vpack.c.bf16 %v4290_v13, %v4289_v14 }
0x103e   :  { %v4910_v9 = vpack.c.bf16 %v4285_v60, %v4284_v61 }
0x1040   :  { %4087 = vmatprep.subr.bf16.mxu1 %v4910_v9 }
0x1043   :  { %v4390_v19 = vpop.eup %4389 }
0x1044   :  { %v4392_v20 = vpop.eup %4391  ;;  %v1461_v43 = vmul.f32 %v4390_v19, %v1441_v34 }
0x1045   :  { %v1460_v17 = vmul.f32 %v4392_v20, %v1440_v35 }
0x1047   :  { %3821 = vmatprep.mubr.msk.f32.mxu1 %vm243_vm3, %v1460_v17 }
0x1048   :  { %3822 = vmatmul.mubr.msk.f32.vlgmr.msra.gmra.mrb[14].mxu1 %vm243_vm3, %v1461_v43 }
0x1049   :  { %4089 = vmatpush3.bf16.msra.mxu1 %v4910_v9 }
0x104a   :  { %4091 = vmatprep.subr.bf16.mxu1 %v4913_v42 }
0x104d   :  { %4093 = vmatpush3.bf16.msra.mxu1 %v4913_v42 }
0x104e   :  { %4095 = vmatprep.subr.bf16.mxu1 %v4901_v47 }
0x111b   :  { %v3823_v15 = vpop.f32.mrb[14].mxu1 }
0x111c   :  { %v1534_v23 = vpop.f32.mrb[15].mxu1 }
0x111d   :  { %3832 = vmatprep.mubr.msk.f32.mxu1 %vm71_vm0, %v1534_v23 }
0x111e   :  { %3833 = vmatmul.mubr.msk.f32.vlgmr.msra.gmra.mrb[16].mxu1 %vm71_vm0, %v3823_v15 }
0x111f   :  { %4097 = vmatpush3.bf16.msra.mxu1 %v4901_v47  ;;  %3843 = vmatprep.mubr.msk.f32.mxu1 %vm71_vm0, %v4848_v62 }
0x1120   :  { %4099 = vmatprep.subr.bf16.mxu1 %v4906_v0 }
0x1123   :  { %4101 = vmatpush3.bf16.msra.mxu1 %v4906_v0 }
0x1126   :  { %3844 = vmatmul.mubr.msk.f32.vlgmr.msra.gmra.mrb[16].mxu1 %vm71_vm0, %v4850_v63 }
0x11f9   :  { %v3845_v34 = vpop.f32.mrb[16].mxu1 }
0x11fa   :  { %v1720_v35 = vadd.f32 %v3845_v34, %v3470_v33  ;;  %v1706_v36 = vpop.f32.mrb[17].mxu1 }
0x11fb   :  { %v1719_v37 = vadd.f32 %v3470_v33, %v1706_v36  ;;  %v5014_v33 = vld [vmem:[%s5251_s1] sm:$0xff] }
0x11fc   :  { %v3472_v38 = vmul.f32 -1.442695, %v1720_v35 }
0x11fd   :  { %v3471_v39 = vmul.f32 -1.442695, %v1719_v37 }
0x11fe   :  { %4393 = vpow2.f32 %v3472_v38 }
0x11ff   :  { %4395 = vpow2.f32 %v3471_v39 }
0x1208   :  { %v4394_v6 = vpop.eup %4393 }
0x1209   :  { %v4396_v40 = vpop.eup %4395  ;;  %v1728_v41 = vadd.f32 1.0, %v4394_v6 }
0x120a   :  { %v1727_v46 = vadd.f32 1.0, %v4396_v40 }
0x120b   :  { %4397 = vrcp.f32 %v1728_v41 }
0x120c   :  { %4399 = vrcp.f32 %v1727_v46 }
0x1215   :  { %v4398_v30 = vpop.eup %4397 }
0x1216   :  { %v4400_v31 = vpop.eup %4399  ;;  %v1736_v1 = vsub.f32 1.0, %v4398_v30  ;;  %v1734_v5 = vmul.f32 %v4398_v30, %v4850_v63 }
0x1217   :  { %v1735_v3 = vsub.f32 1.0, %v4400_v31  ;;  %v1733_v49 = vmul.f32 %v4400_v31, %v4848_v62  ;;  %v1765_v62 = vrot.slane %v4970_v45, %v69_v11 }
0x1218   :  { %v1738_v18 = vmul.f32 %v3823_v15, %v1736_v1 }
0x1219   :  { %v1737_v50 = vmul.f32 %v1735_v3, %v1534_v23  ;;  %v5008_v23 = vld [vmem:[%s5251_s1 + $0x8] sm:$0xff]  ;;  %s5268_s1 = smov 8  }
0x121a   :  { %v4959_v51 = vadd.f32 %v1738_v18, %v1734_v5 }
0x121b   :  { %v4961_v53 = vadd.f32 %v1737_v50, %v1733_v49 }
0x121d   :  { %3854 = vmatprep.mubr.msk.f32.mxu0 %vm71_vm0, %v4961_v53 }
0x121e   :  { %3855 = vmatmul.mubr.msk.f32.vlgmr.msra.gmra.mrb[12].mxu0 %vm71_vm0, %v4959_v51 }
0x12f1   :  { %v3856_v63 = vpop.f32.mrb[12].mxu0 }
0x12f2   :  { %v4975_v56 = vadd.f32 %v3856_v63, %v1765_v62  ;;  %v1838_v57 = vpop.f32.mrb[13].mxu0 }
0x12f3   :  { %v4977_v58 = vadd.f32 %v1838_v57, %v1765_v62 }
0x12f5   :  { %2045 = vrot.lane.b32.xlu0 %v4977_v58, %s4489_s0  ;;  %3861 = vmatprep.mubr.msk.f32.mxu0 %vm159_vm1, %v4977_v58  ;;  %v4985_v59 = vpack.i.bf16 %v4975_v56, %v4977_v58 }
0x12f7   :  { %4292 = vrot.lane.b32.xlu1 %v4985_v59, %s4490_s23 }
0x12fb   :  { %4297 = vrot.lane.b32.xlu1 %v4985_v59, %s4491_s24 }
0x12ff   :  { %2047 = vrot.lane.b32.xlu1 %v4975_v56, %s4489_s0 }
0x1367   :  { %v2046_v17 = vpop.permute.xlu0 %2045 }
0x1369   :  { %v4293_v11 = vpop.permute.xlu1 %4292 }
0x136a   :  { %v4295_v60 = vunpack.i.h.bf16 %v4293_v11  ;;  %v4294_v61 = vunpack.i.l.bf16 %v4293_v11 }
0x136c   :  { %v4110_v7 = vpack.c.bf16 %v4295_v60, %v4294_v61 }
0x136d   :  { %v4298_v13 = vpop.permute.xlu1 %4297 }
0x136e   :  { %v4300_v14 = vunpack.i.h.bf16 %v4298_v13  ;;  %v4299_v19 = vunpack.i.l.bf16 %v4298_v13  ;;  %4112 = vmatprep.subr.msk.bf16.mxu0 %vm4627_vm2, %v4110_v7 }
0x136f   :  { %4115 = vmatpush3.bf16.xpose.msk.msra.mxu0 %vm4627_vm2, %v4110_v7 }
0x1370   :  { %v4120_v20 = vpack.c.bf16 %v4300_v14, %v4299_v19 }
0x1371   :  { %v2048_v43 = vpop.permute.xlu1 %2047 }
0x1372   :  { %4122 = vmatprep.subr.msk.bf16.mxu0 %vm4627_vm2, %v4120_v20 }
0x1376   :  { %3862 = vmatmul.mubr.msk.f32.vlgmr.msra.gmra.mrb[14].mxu0 %vm159_vm1, %v4975_v56 }
0x1377   :  { %4125 = vmatpush3.bf16.xpose.msk.msra.mxu0 %vm4627_vm2, %v4120_v20  ;;  %3875 = vmatprep.mubr.msk.f32.mxu0 %vm159_vm1, %v2046_v17 }
0x137e   :  { %3876 = vmatmul.mubr.msk.f32.vlgmr.msra.gmra.mrb[16].mxu0 %vm159_vm1, %v2048_v43 }
0x1449   :  { %v3863_v15 = vpop.f32.mrb[14].mxu0 }
0x144a   :  { %v1933_v27 = vadd.f32 %v5008_v23, %v3863_v15  ;;  %v1927_v32 = vpop.f32.mrb[15].mxu0 }
0x144b   :  { %v1928_v34 = vadd.f32 %v5014_v33, %v1927_v32 }
0x144c   :  { %v1939_v35 = vsel %vm243_vm3, %v1933_v27, -inf }
0x144d   :  { %1940 = vmax.xlane.f32.xlu1 %v1939_v35  ;;  %v1936_v36 = vsel %vm243_vm3, %v1928_v34, -inf }
0x144e   :  { %1937 = vmax.xlane.f32.xlu0 %v1936_v36 }
0x1451   :  { %v3877_v37 = vpop.f32.mrb[16].mxu0 }
0x1452   :  { %v2127_v38 = vpop.f32.mrb[17].mxu0  ;;  %v2133_v6 = vadd.f32 %v5008_v23, %v3877_v37 }
0x1453   :  { %v2128_v39 = vadd.f32 %v5014_v33, %v2127_v38 }
0x1454   :  { %v2139_v41 = vsel %vm243_vm3, %v2133_v6, -inf }
0x1455   :  { %v2136_v40 = vsel %vm243_vm3, %v2128_v39, -inf }
0x1456   :  { %2137 = vmax.xlane.f32.xlu0 %v2136_v40 }
0x145a   :  { %2140 = vmax.xlane.f32.xlu0 %v2139_v41 }
0x145e   :  { %4302 = vrot.lane.b32.xlu1 %v4985_v59, %s4492_s29  ;;  %s5269_s29 = smov 16  }
0x14da   :  { %v1941_v46 = vpop.xlane.xlu1 %1940 }
0x14db   :  { %v1943_v30 = vsub.f32 %v1933_v27, %v1941_v46  ;;  %v1938_v31 = vpop.xlane.xlu0 %1937 }
0x14dc   :  { %v1942_v1 = vsub.f32 %v1928_v34, %v1938_v31 }
0x14dd   :  { %v1946_v3 = vmul.f32 1.442695, %v1943_v30 }
0x14de   :  { %v1944_v5 = vmul.f32 1.442695, %v1942_v1  ;;  %v4303_v18 = vpop.permute.xlu1 %4302 }
0x14df   :  { %4401 = vpow2.f32 %v1946_v3  ;;  %v4305_v49 = vunpack.i.h.bf16 %v4303_v18  ;;  %v4304_v50 = vunpack.i.l.bf16 %v4303_v18 }
0x14e0   :  { %4403 = vpow2.f32 %v1944_v5 }
0x14e1   :  { %v4116_v62 = vpack.c.bf16 %v4305_v49, %v4304_v50 }
0x14e3   :  { %4117 = vmatprep.subr.bf16.mxu1 %v4116_v62  ;;  %v2138_v63 = vpop.xlane.xlu0 %2137 }
0x14e4   :  { %4119 = vmatpush3.bf16.msra.mxu1 %v4116_v62  ;;  %v2142_v17 = vsub.f32 %v2128_v39, %v2138_v63 }
0x14e6   :  { %v2144_v43 = vmul.f32 1.442695, %v2142_v17 }
0x14e7   :  { %v2141_v57 = vpop.xlane.xlu0 %2140 }
0x14e8   :  { %v2143_v11 = vsub.f32 %v2133_v6, %v2141_v57 }
0x14e9   :  { %v4402_v60 = vpop.eup %4401 }
0x14ea   :  { %v4404_v61 = vpop.eup %4403  ;;  %v2146_v7 = vmul.f32 1.442695, %v2143_v11  ;;  %v1951_v13 = vsel %vm243_vm3, %v4402_v60, 0.0 }
0x14eb   :  { %1952 = vadd.xlane.f32.xlu0 %v1951_v13  ;;  %v1948_v14 = vsel %vm243_vm3, %v4404_v61, 0.0 }
0x14ec   :  { %4405 = vpow2.f32 %v2146_v7  ;;  %1949 = vadd.xlane.f32.xlu1 %v1948_v14 }
0x14ed   :  { %4407 = vpow2.f32 %v2144_v43 }
0x14f6   :  { %v4406_v19 = vpop.eup %4405 }
0x14f7   :  { %v2151_v20 = vsel %vm243_vm3, %v4406_v19, 0.0  ;;  %v4408_v15 = vpop.eup %4407 }
0x14f8   :  { %2152 = vadd.xlane.f32.xlu0 %v2151_v20  ;;  %v2148_v27 = vsel %vm243_vm3, %v4408_v15, 0.0 }
0x14fd   :  { %4312 = vrot.lane.b32.xlu1 %v4985_v59, %s4493_s30  ;;  %s5270_s30 = smov 24  }
0x150e   :  { %4307 = vrot.lane.b32.xlu0 %v4985_v59, %s4494_s10 }
0x1512   :  { %2247 = vrot.lane.b32.xlu0 %v4975_v56, %s4495_s11 }
0x1521   :  { %2149 = vadd.xlane.f32.xlu1 %v2148_v27 }
0x1532   :  { %2245 = vrot.lane.b32.xlu1 %v4977_v58, %s4495_s11 }
0x1578   :  { %v1953_v32 = vpop.xlane.xlu0 %1952 }
0x1579   :  { %4409 = vrcp.f32 %v1953_v32  ;;  %v1950_v34 = vpop.xlane.xlu1 %1949 }
0x157a   :  { %4411 = vrcp.f32 %v1950_v34 }
0x157d   :  { %v4313_v6 = vpop.permute.xlu1 %4312 }
0x157e   :  { %v4315_v41 = vunpack.i.h.bf16 %v4313_v6  ;;  %v4314_v46 = vunpack.i.l.bf16 %v4313_v6 }
0x1580   :  { %v4130_v3 = vpack.c.bf16 %v4315_v41, %v4314_v46 }
0x1583   :  { %v4410_v35 = vpop.eup %4409 }
0x1584   :  { %v4412_v36 = vpop.eup %4411  ;;  %v1957_v39 = vmul.f32 %v4410_v35, %v4402_v60 }
0x1585   :  { %v2153_v37 = vpop.xlane.xlu0 %2152  ;;  %v1956_v38 = vmul.f32 %v4412_v36, %v4404_v61 }
0x1586   :  { %4413 = vrcp.f32 %v2153_v37 }
0x1587   :  { %3868 = vmatprep.mubr.msk.f32.mxu1 %vm243_vm3, %v1956_v38 }
0x1588   :  { %3869 = vmatmul.mubr.msk.f32.vlgmr.msra.gmra.mrb[18].mxu1 %vm243_vm3, %v1957_v39 }
0x1589   :  { %v4308_v40 = vpop.permute.xlu0 %4307 }
0x158a   :  { %v4310_v30 = vunpack.i.h.bf16 %v4308_v40  ;;  %v4309_v31 = vunpack.i.l.bf16 %v4308_v40 }
0x158c   :  { %v4126_v1 = vpack.c.bf16 %v4310_v30, %v4309_v31 }
0x158d   :  { %v2248_v57 = vpop.permute.xlu0 %2247 }
0x158e   :  { %4127 = vmatprep.subr.bf16.mxu1 %v4126_v1 }
0x158f   :  { %4129 = vmatpush3.bf16.msra.mxu1 %v4126_v1 }
0x1590   :  { %4132 = vmatprep.subr.msk.bf16.mxu1 %vm4627_vm2, %v4130_v3  ;;  %v4414_v18 = vpop.eup %4413 }
0x1591   :  { %v2157_v62 = vmul.f32 %v4414_v18, %v4406_v19 }
0x15ae   :  { %v2150_v5 = vpop.xlane.xlu1 %2149 }
0x15af   :  { %4415 = vrcp.f32 %v2150_v5 }
0x15b2   :  { %v2246_v63 = vpop.permute.xlu1 %2245 }
0x15b9   :  { %v4416_v49 = vpop.eup %4415 }
0x15ba   :  { %v2156_v50 = vmul.f32 %v4416_v49, %v4408_v15 }
0x15bc   :  { %3882 = vmatprep.mubr.msk.f32.mxu1 %vm243_vm3, %v2156_v50 }
0x15bd   :  { %3883 = vmatmul.mubr.msk.f32.vlgmr.msra.gmra.mrb[20].mxu1 %vm243_vm3, %v2157_v62 }
0x15be   :  { %4135 = vmatpush3.bf16.xpose.msk.msra.mxu1 %vm4627_vm2, %v4130_v3  ;;  %3889 = vmatprep.mubr.msk.f32.mxu1 %vm159_vm1, %v2246_v63 }
0x15c5   :  { %3890 = vmatmul.mubr.msk.f32.vlgmr.msra.gmra.mrb[22].mxu1 %vm159_vm1, %v2248_v57 }
0x165b   :  { %v5047_v11 = vpop.f32.mrb[18].mxu1 }
0x165c   :  { %v5049_v60 = vpop.f32.mrb[19].mxu1 }
0x1690   :  { %v5051_v61 = vpop.f32.mrb[20].mxu1 }
0x1691   :  { %v5053_v7 = vpop.f32.mrb[21].mxu1 }
0x1698   :  { %v3891_v13 = vpop.f32.mrb[22].mxu1 }
0x1699   :  { %v2333_v14 = vadd.f32 %v5008_v23, %v3891_v13  ;;  %v2327_v19 = vpop.f32.mrb[23].mxu1 }
0x169a   :  { %v2328_v20 = vadd.f32 %v5014_v33, %v2327_v19 }
0x169b   :  { %v2339_v17 = vsel %vm243_vm3, %v2333_v14, -inf }
0x169c   :  { %2340 = vmax.xlane.f32.xlu0 %v2339_v17  ;;  %v2336_v43 = vsel %vm243_vm3, %v2328_v20, -inf }
0x169d   :  { %2337 = vmax.xlane.f32.xlu1 %v2336_v43 }
0x1729   :  { %v2341_v15 = vpop.xlane.xlu0 %2340 }
0x172a   :  { %v2343_v27 = vsub.f32 %v2333_v14, %v2341_v15  ;;  %v2338_v32 = vpop.xlane.xlu1 %2337 }
0x172b   :  { %v2342_v34 = vsub.f32 %v2328_v20, %v2338_v32 }
0x172c   :  { %v2346_v35 = vmul.f32 1.442695, %v2343_v27 }
0x172d   :  { %v2344_v36 = vmul.f32 1.442695, %v2342_v34 }
0x172e   :  { %4417 = vpow2.f32 %v2346_v35 }
0x172f   :  { %4419 = vpow2.f32 %v2344_v36 }
0x1738   :  { %v4418_v37 = vpop.eup %4417 }
0x1739   :  { %v4420_v38 = vpop.eup %4419  ;;  %v2351_v39 = vsel %vm243_vm3, %v4418_v37, 0.0 }
0x173a   :  { %2352 = vadd.xlane.f32.xlu1 %v2351_v39  ;;  %v2348_v6 = vsel %vm243_vm3, %v4420_v38, 0.0 }
0x173b   :  { %2349 = vadd.xlane.f32.xlu0 %v2348_v6  ;;  %v4331_v6 = vpack.i.bf16 %v4938_v26, %v4933_v25 }
0x174b   :  { %4322 = vrot.lane.b32.xlu1 %v4985_v59, %s4496_s12 }
0x174f   :  { %2445 = vrot.lane.b32.xlu1 %v4977_v58, %s4497_s13 }
0x1751   :  { %4317 = vrot.lane.b32.xlu0 %v4985_v59, %s4498_s14 }
0x1755   :  { %2447 = vrot.lane.b32.xlu0 %v4975_v56, %s4497_s13 }
0x17c7   :  { %v2353_v40 = vpop.xlane.xlu1 %2352 }
0x17c8   :  { %4421 = vrcp.f32 %v2353_v40  ;;  %v2350_v41 = vpop.xlane.xlu0 %2349  ;;  %v4336_v40 = vpack.i.bf16 %v4950_v29, %v4945_v28 }
0x17c9   :  { %4423 = vrcp.f32 %v2350_v41 }
0x17cb   :  { %v4323_v46 = vpop.permute.xlu1 %4322 }
0x17cc   :  { %v4318_v30 = vpop.permute.xlu0 %4317  ;;  %v4325_v31 = vunpack.i.h.bf16 %v4323_v46  ;;  %v4324_v1 = vunpack.i.l.bf16 %v4323_v46 }
0x17cd   :  { %v4320_v3 = vunpack.i.h.bf16 %v4318_v30  ;;  %v4319_v5 = vunpack.i.l.bf16 %v4318_v30 }
0x17ce   :  { %v4140_v49 = vpack.c.bf16 %v4325_v31, %v4324_v1 }
0x17cf   :  { %v4136_v18 = vpack.c.bf16 %v4320_v3, %v4319_v5  ;;  %v2446_v63 = vpop.permute.xlu1 %2445 }
0x17d0   :  { %v2448_v57 = vpop.permute.xlu0 %2447 }
0x17d1   :  { %4137 = vmatprep.subr.bf16.mxu0 %v4136_v18 }
0x17d2   :  { %v4422_v58 = vpop.eup %4421  ;;  %4139 = vmatpush3.bf16.msra.mxu0 %v4136_v18 }
0x17d3   :  { %v4424_v50 = vpop.eup %4423  ;;  %4142 = vmatprep.subr.msk.bf16.mxu0 %vm4627_vm2, %v4140_v49  ;;  %v2357_v62 = vmul.f32 %v4422_v58, %v4418_v37 }
0x17d4   :  { %v2356_v56 = vmul.f32 %v4424_v50, %v4420_v38 }
0x17d6   :  { %3896 = vmatprep.mubr.msk.f32.mxu0 %vm243_vm3, %v2356_v56 }
0x17d7   :  { %3897 = vmatmul.mubr.msk.f32.vlgmr.msra.gmra.mrb[18].mxu0 %vm243_vm3, %v2357_v62 }
0x17d8   :  { %3903 = vmatprep.mubr.msk.f32.mxu0 %vm159_vm1, %v2446_v63 }
0x17db   :  { %4145 = vmatpush3.bf16.xpose.msk.msra.mxu0 %vm4627_vm2, %v4140_v49 }
0x17e2   :  { %3904 = vmatmul.mubr.msk.f32.vlgmr.msra.gmra.mrb[20].mxu0 %vm159_vm1, %v2448_v57 }
0x18aa   :  { %v3898_v13 = vpop.f32.mrb[18].mxu0 }
0x18ab   :  { %v2436_v14 = vpop.f32.mrb[19].mxu0 }
0x18b5   :  { %v3905_v19 = vpop.f32.mrb[20].mxu0 }
0x18b6   :  { %v2533_v20 = vadd.f32 %v5008_v23, %v3905_v19  ;;  %v2527_v17 = vpop.f32.mrb[21].mxu0 }
0x18b7   :  { %v2528_v43 = vadd.f32 %v5014_v33, %v2527_v17 }
0x18b8   :  { %v2539_v15 = vsel %vm243_vm3, %v2533_v20, -inf }
0x18b9   :  { %2540 = vmax.xlane.f32.xlu0 %v2539_v15  ;;  %v2536_v27 = vsel %vm243_vm3, %v2528_v43, -inf }
0x18ba   :  { %2537 = vmax.xlane.f32.xlu1 %v2536_v27 }
0x1946   :  { %v2541_v32 = vpop.xlane.xlu0 %2540 }
0x1947   :  { %v2543_v22 = vsub.f32 %v2533_v20, %v2541_v32  ;;  %v2538_v34 = vpop.xlane.xlu1 %2537 }
0x1948   :  { %v2542_v35 = vsub.f32 %v2528_v43, %v2538_v34 }
0x1949   :  { %v2546_v36 = vmul.f32 1.442695, %v2543_v22 }
0x194a   :  { %v2544_v37 = vmul.f32 1.442695, %v2542_v35 }
0x194b   :  { %4425 = vpow2.f32 %v2546_v36 }
0x194c   :  { %4427 = vpow2.f32 %v2544_v37 }
0x1955   :  { %v4426_v38 = vpop.eup %4425 }
0x1956   :  { %v4428_v39 = vpop.eup %4427  ;;  %v2551_v23 = vsel %vm243_vm3, %v4426_v38, 0.0 }
0x1957   :  { %2552 = vadd.xlane.f32.xlu1 %v2551_v23  ;;  %v2548_v33 = vsel %vm243_vm3, %v4428_v39, 0.0 }
0x1958   :  { %2549 = vadd.xlane.f32.xlu0 %v2548_v33 }
0x1968   :  { %4332 = vrot.lane.b32.xlu1 %v4331_v6, %s4499_s15 }
0x196c   :  { %4337 = vrot.lane.b32.xlu1 %v4336_v40, %s4499_s15 }
0x196e   :  { %4327 = vrot.lane.b32.xlu0 %v4985_v59, %s4500_s16 }
0x1970   :  { %2649 = vrot.lane.b32.xlu1 %v5051_v61, %s5268_s1 }
0x1972   :  { %2647 = vrot.lane.b32.xlu0 %v5053_v7, %s5268_s1 }
0x1974   :  { %2657 = vrot.lane.b32.xlu1 %v3898_v13, %s5269_s29 }
0x1976   :  { %2655 = vrot.lane.b32.xlu0 %v2436_v14, %s5269_s29 }
0x19e4   :  { %v2553_v25 = vpop.xlane.xlu1 %2552 }
0x19e5   :  { %4429 = vrcp.f32 %v2553_v25  ;;  %v2550_v26 = vpop.xlane.xlu0 %2549 }
0x19e6   :  { %4431 = vrcp.f32 %v2550_v26 }
0x19e8   :  { %v4333_v28 = vpop.permute.xlu1 %4332 }
0x19e9   :  { %v4335_v29 = vunpack.i.h.bf16 %v4333_v28  ;;  %v4334_v41 = vunpack.i.l.bf16 %v4333_v28  ;;  %v4328_v46 = vpop.permute.xlu0 %4327 }
0x19ea   :  { %v4330_v30 = vunpack.i.h.bf16 %v4328_v46  ;;  %v4329_v59 = vunpack.i.l.bf16 %v4328_v46  ;;  %v3476_v46 = vld [vmem:[%s5255_s5 + $0x58] sm:$0xff] }
0x19eb   :  { %v4150_v31 = vpack.c.bf16 %v4335_v29, %v4334_v41 }
0x19ec   :  { %v4146_v1 = vpack.c.bf16 %v4330_v30, %v4329_v59  ;;  %v4338_v61 = vpop.permute.xlu1 %4337  ;;  %v3478_v59 = vld [vmem:[%s5255_s5 + $0x68] sm:$0xff] }
0x19ed   :  { %v4340_v3 = vunpack.i.h.bf16 %v4338_v61  ;;  %v4339_v5 = vunpack.i.l.bf16 %v4338_v61  ;;  %v2648_v57 = vpop.permute.xlu0 %2647  ;;  %v3481_v61 = vld [vmem:[%s5256_s6 + $0x40] sm:$0xff] }
0x19ee   :  { %4147 = vmatprep.subr.bf16.mxu1 %v4146_v1  ;;  %v2669_v19 = vsel %vm159_vm1, %v5049_v60, %v2648_v57  ;;  %v2678_v60 = vrot.slane %v4970_v45, %v986_v21 }
0x19ef   :  { %v4430_v7 = vpop.eup %4429  ;;  %4149 = vmatpush3.bf16.msra.mxu1 %v4146_v1  ;;  %v4154_v50 = vpack.c.bf16 %v4340_v3, %v4339_v5  ;;  %v3482_v3 = vld [vmem:[%s5256_s6 + $0x48] sm:$0xff]  ;;  %v3483_v5 = vld [vmem:[%s5256_s6 + $0x50] sm:$0xff] }
0x19f0   :  { %v4432_v18 = vpop.eup %4431  ;;  %4151 = vmatprep.subr.bf16.mxu1 %v4150_v31  ;;  %v2557_v58 = vmul.f32 %v4430_v7, %v4426_v38  ;;  %v2650_v63 = vpop.permute.xlu1 %2649  ;;  %v4166_v7 = vpack.c.bf16 %v3482_v3, %v3481_v61 }
0x19f1   :  { %v2556_v49 = vmul.f32 %v4432_v18, %v4428_v39  ;;  %v2656_v14 = vpop.permute.xlu0 %2655  ;;  %v2670_v17 = vsel %vm159_vm1, %v5047_v11, %v2650_v63  ;;  %v3484_v18 = vld [vmem:[%s5256_s6 + $0x58] sm:$0xff] }
0x19f2   :  { %v2671_v43 = vsel %vm243_vm3, %v2669_v19, %v2656_v14 }
0x19f3   :  { %3910 = vmatprep.mubr.msk.f32.mxu1 %vm243_vm3, %v2556_v49  ;;  %v4170_v49 = vpack.c.bf16 %v3484_v18, %v3483_v5 }
0x19f4   :  { %3911 = vmatmul.mubr.msk.f32.vlgmr.msra.gmra.mrb[24].mxu1 %vm243_vm3, %v2557_v58  ;;  %v2658_v13 = vpop.permute.xlu1 %2657  ;;  %v3485_v58 = vld [vmem:[%s5256_s6 + $0x60] sm:$0xff] }
0x19f5   :  { %4153 = vmatpush3.bf16.msra.mxu1 %v4150_v31  ;;  %v2672_v27 = vsel %vm243_vm3, %v2670_v17, %v2658_v13  ;;  %v3480_v31 = vld [vmem:[%s5255_s5 + $0x78] sm:$0xff] }
0x19f6   :  { %4155 = vmatprep.subr.bf16.mxu1 %v4154_v50  ;;  %v4162_v1 = vpack.c.bf16 %v3480_v31, %v3478_v59 }
0x19f9   :  { %4157 = vmatpush3.bf16.msra.mxu1 %v4154_v50  ;;  %v3486_v50 = vld [vmem:[%s5256_s6 + $0x68] sm:$0xff] }
0x19fa   :  { %4167 = vmatprep.subr.bf16.mxu1 %v4166_v7 }
0x1ac7   :  { %v3912_v56 = vpop.f32.mrb[24].mxu1 }
0x1ac8   :  { %2665 = vrot.lane.b32.xlu1 %v3912_v56, %s5270_s30  ;;  %v2636_v62 = vpop.f32.mrb[25].mxu1  ;;  %v4174_v56 = vpack.c.bf16 %v3486_v50, %v3485_v58  ;;  %v3019_v50 = vrot.slane %v4970_v45, %v1329_v44 }
0x1ac9   :  { %2663 = vrot.lane.b32.xlu0 %v2636_v62, %s5270_s30 }
0x1b3a   :  { %v2666_v20 = vpop.permute.xlu1 %2665 }
0x1b3b   :  { %v2664_v15 = vpop.permute.xlu0 %2663  ;;  %v2674_v22 = vsel %vm981_vm4, %v2672_v27, %v2666_v20  ;;  %v2807_v20 = vrot.slane %v4970_v45, %v1116_v54  ;;  %v3487_v54 = vld [vmem:[%s5256_s6 + $0x70] sm:$0xff] }
0x1b3c   :  { %v2673_v32 = vsel %vm981_vm4, %v2671_v43, %v2664_v15  ;;  %v2813_v15 = vrot.slane %v4970_v45, %v1122_v55  ;;  %v3488_v55 = vld [vmem:[%s5256_s6 + $0x78] sm:$0xff] }
0x1b3d   :  { %3921 = vmatprep.mubr.msk.f32.mxu1 %vm71_vm0, %v2673_v32 }
0x1b3e   :  { %3922 = vmatmul.mubr.msk.f32.vlgmr.msra.gmra.mrb[26].mxu1 %vm71_vm0, %v2674_v22 }
0x1b3f   :  { %4169 = vmatpush3.bf16.msra.mxu1 %v4166_v7 }
0x1b40   :  { %4171 = vmatprep.subr.bf16.mxu1 %v4170_v49 }
0x1b43   :  { %4173 = vmatpush3.bf16.msra.mxu1 %v4170_v49 }
0x1b44   :  { %4175 = vmatprep.subr.bf16.mxu1 %v4174_v56 }
0x1b47   :  { %4177 = vmatpush3.bf16.msra.mxu1 %v4174_v56 }
0x1c11   :  { %v3923_v34 = vpop.f32.mrb[26].mxu1 }
0x1c12   :  { %v2773_v35 = vadd.f32 %v3923_v34, %v2678_v60  ;;  %v2767_v11 = vpop.f32.mrb[27].mxu1 }
0x1c13   :  { %v2768_v36 = vadd.f32 %v2767_v11, %v2678_v60  ;;  %v4178_v11 = vpack.c.bf16 %v3488_v55, %v3487_v54 }
0x1c14   :  { %v2777_v37 = vadd.f32 %v2773_v35, %v4959_v51 }
0x1c15   :  { %v2776_v38 = vadd.f32 %v2768_v36, %v4961_v53  ;;  %v3474_v53 = vld [vmem:[%s5255_s5 + $0x48] sm:$0xff]  ;;  %4179 = vmatprep.subr.bf16.mxu1 %v4178_v11 }
0x1c16   :  { %v2781_v39 = vsel %vm71_vm0, %v2777_v37, 0.0  ;;  %v4158_v30 = vpack.c.bf16 %v3476_v46, %v3474_v53  ;;  %4181 = vmatpush3.bf16.msra.mxu1 %v4178_v11 }
0x1c17   :  { %2782 = vadd.xlane.f32.xlu1 %v2781_v39  ;;  %v2778_v23 = vsel %vm71_vm0, %v2776_v38, 0.0 }
0x1c18   :  { %2779 = vadd.xlane.f32.xlu0 %v2778_v23  ;;  %4159 = vmatprep.subr.bf16.mxu0 %v4158_v30 }
0x1c19   :  { %4161 = vmatpush3.bf16.msra.mxu0 %v4158_v30 }
0x1c1a   :  { %4163 = vmatprep.subr.bf16.mxu0 %v4162_v1 }
0x1c1d   :  { %4165 = vmatpush3.bf16.msra.mxu0 %v4162_v1 }
0x1c1e   :  { %4183 = vmatprep.subr.bf16.mxu0 %v4826_v48 }
0x1ca4   :  { %v2783_v33 = vpop.xlane.xlu1 %2782 }
0x1ca5   :  { %v2785_v6 = vmul.f32 0.03125, %v2783_v33  ;;  %v2780_v40 = vpop.xlane.xlu0 %2779  ;;  %v2906_v33 = vrot.slane %v4970_v45, %v1215_v24 }
0x1ca6   :  { %v2784_v25 = vmul.f32 0.03125, %v2780_v40 }
0x1ca7   :  { %v2787_v26 = vsub.f32 %v2777_v37, %v2785_v6 }
0x1ca8   :  { %v2786_v21 = vsub.f32 %v2776_v38, %v2784_v25 }
0x1ca9   :  { %v2789_v41 = vmul.f32 %v2787_v26, %v2787_v26 }
0x1caa   :  { %v2788_v28 = vmul.f32 %v2786_v21, %v2786_v21 }
0x1cab   :  { %v2793_v51 = vsel %vm71_vm0, %v2789_v41, 0.0 }
0x1cac   :  { %v2790_v29 = vsel %vm71_vm0, %v2788_v28, 0.0 }
0x1cad   :  { %2791 = vadd.xlane.f32.xlu0 %v2790_v29 }
0x1cb1   :  { %2794 = vadd.xlane.f32.xlu0 %v2793_v51 }
0x1d3a   :  { %v2792_v62 = vpop.xlane.xlu0 %2791 }
0x1d3b   :  { %v2796_v63 = vmul.f32 0.03125, %v2792_v62 }
0x1d3d   :  { %v2798_v57 = vadd.f32 1e-05, %v2796_v63 }
0x1d3e   :  { %v2795_v13 = vpop.xlane.xlu0 %2794 }
0x1d3f   :  { %4433 = vrsqrt.f32 %v2798_v57  ;;  %v2797_v14 = vmul.f32 0.03125, %v2795_v13  ;;  %v3025_v13 = vrot.slane %v4970_v45, %v1335_v52 }
0x1d41   :  { %v2799_v19 = vadd.f32 1e-05, %v2797_v14 }
0x1d43   :  { %4435 = vrsqrt.f32 %v2799_v19 }
0x1d49   :  { %v4434_v17 = vpop.eup %4433 }
0x1d4a   :  { %v2802_v43 = vmul.f32 %v4434_v17, %v2786_v21 }
0x1d4c   :  { %v2808_v27 = vmul.f32 %v2807_v20, %v2802_v43 }
0x1d4d   :  { %v4436_v32 = vpop.eup %4435 }
0x1d4e   :  { %v2803_v22 = vmul.f32 %v4436_v32, %v2787_v26  ;;  %v2814_v60 = vadd.f32 %v2813_v15, %v2808_v27 }
0x1d50   :  { %v2809_v34 = vmul.f32 %v2807_v20, %v2803_v22  ;;  %3932 = vmatprep.mubr.msk.f32.mxu0 %vm71_vm0, %v2814_v60 }
0x1d52   :  { %v2815_v35 = vadd.f32 %v2813_v15, %v2809_v34 }
0x1d54   :  { %3933 = vmatmul.mubr.msk.f32.vlgmr.msra.gmra.mrb[22].mxu0 %vm71_vm0, %v2815_v35 }
0x1d55   :  { %4185 = vmatpush3.bf16.msra.mxu0 %v4826_v48  ;;  %v2819_v48 = vrot.slane %v4970_v45, %v1128_v16 }
0x1d56   :  { %4187 = vmatprep.subr.bf16.mxu0 %v4835_v2 }
0x1d59   :  { %4189 = vmatpush3.bf16.msra.mxu0 %v4835_v2 }
0x1d5a   :  { %4191 = vmatprep.subr.bf16.mxu0 %v4888_v8 }
0x1e27   :  { %v3934_v36 = vpop.f32.mrb[22].mxu0 }
0x1e28   :  { %v2898_v37 = vadd.f32 %v3934_v36, %v2819_v48  ;;  %v2892_v2 = vpop.f32.mrb[23].mxu0 }
0x1e29   :  { %v2893_v38 = vadd.f32 %v2892_v2, %v2819_v48 }
0x1e2a   :  { %v2902_v23 = vmax.f32 %v2898_v37, 0.0  ;;  %v4463_v37 = vld [vmem:[%s5254_s4 + $0x8] sm:$0xff] }
0x1e2b   :  { %v2901_v39 = vmax.f32 %v2893_v38, 0.0 }
0x1e2d   :  { %3951 = vmatprep.mubr.msk.f32.mxu1 %vm1217_vm5, %v2901_v39 }
0x1e2e   :  { %3952 = vmatmul.mubr.msk.f32.vlgmr.msra.gmra.mrb[28].mxu1 %vm1217_vm5, %v2902_v23 }
0x1f01   :  { %v3953_v6 = vpop.f32.mrb[28].mxu1 }
0x1f02   :  { %v2985_v40 = vadd.f32 %v3953_v6, %v2906_v33  ;;  %v2979_v25 = vpop.f32.mrb[29].mxu1 }
0x1f03   :  { %v2980_v26 = vadd.f32 %v2979_v25, %v2906_v33 }
0x1f04   :  { %v2989_v21 = vadd.f32 %v2985_v40, %v2815_v35 }
0x1f05   :  { %v2988_v16 = vadd.f32 %v2980_v26, %v2814_v60 }
0x1f06   :  { %v2993_v28 = vsel %vm71_vm0, %v2989_v21, 0.0 }
0x1f07   :  { %2994 = vadd.xlane.f32.xlu0 %v2993_v28  ;;  %v2990_v29 = vsel %vm71_vm0, %v2988_v16, 0.0 }
0x1f08   :  { %2991 = vadd.xlane.f32.xlu1 %v2990_v29 }
0x1f94   :  { %v2995_v41 = vpop.xlane.xlu0 %2994 }
0x1f95   :  { %v2997_v51 = vmul.f32 0.03125, %v2995_v41  ;;  %v2992_v53 = vpop.xlane.xlu1 %2991 }
0x1f96   :  { %v2996_v46 = vmul.f32 0.03125, %v2992_v53 }
0x1f97   :  { %v2999_v30 = vsub.f32 %v2989_v21, %v2997_v51 }
0x1f98   :  { %v2998_v59 = vsub.f32 %v2988_v16, %v2996_v46 }
0x1f99   :  { %v3001_v31 = vmul.f32 %v2999_v30, %v2999_v30 }
0x1f9a   :  { %v3000_v24 = vmul.f32 %v2998_v59, %v2998_v59 }
0x1f9b   :  { %v3005_v1 = vsel %vm71_vm0, %v3001_v31, 0.0 }
0x1f9c   :  { %3006 = vadd.xlane.f32.xlu0 %v3005_v1  ;;  %v3002_v61 = vsel %vm71_vm0, %v3000_v24, 0.0 }
0x1f9d   :  { %3003 = vadd.xlane.f32.xlu1 %v3002_v61 }
0x2029   :  { %v3007_v3 = vpop.xlane.xlu0 %3006 }
0x202a   :  { %v3009_v5 = vmul.f32 0.03125, %v3007_v3  ;;  %v3004_v7 = vpop.xlane.xlu1 %3003 }
0x202b   :  { %v3008_v18 = vmul.f32 0.03125, %v3004_v7 }
0x202c   :  { %v3011_v49 = vadd.f32 1e-05, %v3009_v5 }
0x202d   :  { %v3010_v58 = vadd.f32 1e-05, %v3008_v18 }
0x202e   :  { %4437 = vrsqrt.f32 %v3011_v49 }
0x202f   :  { %4439 = vrsqrt.f32 %v3010_v58 }
0x2038   :  { %v4438_v56 = vpop.eup %4437 }
0x2039   :  { %v4440_v62 = vpop.eup %4439  ;;  %v3015_v63 = vmul.f32 %v4438_v56, %v2999_v30 }
0x203a   :  { %v3014_v57 = vmul.f32 %v4440_v62, %v2998_v59 }
0x203b   :  { %v3021_v14 = vmul.f32 %v3019_v50, %v3015_v63 }
0x203c   :  { %v3020_v19 = vmul.f32 %v3019_v50, %v3014_v57 }
0x203d   :  { %v5189_v17 = vadd.f32 %v3025_v13, %v3021_v14 }
0x203e   :  { %v5187_v20 = vadd.f32 %v3025_v13, %v3020_v19 }
0x2040   :  { %3962 = vmatprep.mubr.msk.f32.mxu0 %vm71_vm0, %v5187_v20 }
0x2041   :  { %3963 = vmatmul.mubr.msk.f32.vlgmr.msra.gmra.mrb[24].mxu0 %vm71_vm0, %v5189_v17 }
0x2042   :  { %4193 = vmatpush3.bf16.msra.mxu0 %v4888_v8 }
0x2043   :  { %4195 = vmatprep.subr.bf16.mxu0 %v4910_v9 }
0x2114   :  { %v3964_v44 = vpop.f32.mrb[24].mxu0 }
0x2115   :  { %v3110_v10 = vsel %vm1421_vm6, %v3964_v44, -1e+30  ;;  %v3100_v52 = vpop.f32.mrb[25].mxu0 }
0x2116   :  { %v3114_v45 = vsel %vm243_vm3, %v3110_v10, -inf  ;;  %v3109_v43 = vsel %vm1420_vm7, %v3100_v52, -1e+30 }
0x2117   :  { %3115 = vmax.xlane.f32.xlu0 %v3114_v45  ;;  %v3111_v15 = vsel %vm243_vm3, %v3109_v43, -inf }
0x2118   :  { %3112 = vmax.xlane.f32.xlu1 %v3111_v15 }
0x21a4   :  { %v3116_v27 = vpop.xlane.xlu0 %3115 }
0x21a5   :  { %v3118_v32 = vmax.f32 %v3116_v27, 0.0  ;;  %v3113_v22 = vpop.xlane.xlu1 %3112 }
0x21a6   :  { %v3117_v8 = vmax.f32 %v3113_v22, 0.0 }
0x21a7   :  { %v3120_v60 = vsel %vm1421_vm6, %v3964_v44, %v3118_v32  ;;  %v3136_v23 = vsub.f32 0.0, %v3118_v32 }
0x21a8   :  { %v3122_v34 = vsub.f32 %v3120_v60, %v3118_v32  ;;  %v3119_v35 = vsel %vm1420_vm7, %v3100_v52, %v3117_v8  ;;  %v3135_v33 = vsub.f32 0.0, %v3117_v8 }
0x21a9   :  { %v3121_v54 = vsub.f32 %v3119_v35, %v3117_v8  ;;  %v3139_v6 = vmul.f32 1.442695, %v3136_v23 }
0x21aa   :  { %v3125_v55 = vmul.f32 1.442695, %v3122_v34  ;;  %v3137_v40 = vmul.f32 1.442695, %v3135_v33 }
0x21ab   :  { %v3123_v11 = vmul.f32 1.442695, %v3121_v54 }
0x21ac   :  { %4441 = vpow2.f32 %v3125_v55 }
0x21ad   :  { %4443 = vpow2.f32 %v3123_v11 }
0x21ae   :  { %4445 = vpow2.f32 %v3139_v6 }
0x21af   :  { %4447 = vpow2.f32 %v3137_v40 }
0x21b6   :  { %v4442_v48 = vpop.eup %4441 }
0x21b7   :  { %v4444_v36 = vpop.eup %4443  ;;  %v3128_v2 = vmul.f32 %v4463_v37, %v4442_v48 }
0x21b8   :  { %v3127_v38 = vmul.f32 %v4464_v4, %v4444_v36  ;;  %v4446_v25 = vpop.eup %4445 }
0x21b9   :  { %v3132_v12 = vsel %vm243_vm3, %v3128_v2, 0.0  ;;  %v4448_v26 = vpop.eup %4447  ;;  %v3142_v21 = vmul.f32 1e-10, %v4446_v25 }
0x21ba   :  { %3133 = vadd.xlane.f32.xlu0 %v3132_v12  ;;  %v3129_v39 = vsel %vm243_vm3, %v3127_v38, 0.0  ;;  %v3141_v28 = vmul.f32 1e-10, %v4448_v26 }
0x21bb   :  { %3130 = vadd.xlane.f32.xlu1 %v3129_v39 }
0x2247   :  { %v3134_v16 = vpop.xlane.xlu0 %3133 }
0x2248   :  { %v3144_v29 = vadd.f32 %v3142_v21, %v3134_v16  ;;  %v3131_v41 = vpop.xlane.xlu1 %3130 }
0x2249   :  { %v3143_v51 = vadd.f32 %v3141_v28, %v3131_v41 }
0x224a   :  { %4449 = vrcp.f32 %v3144_v29 }
0x224b   :  { %4451 = vrcp.f32 %v3143_v51 }
0x2254   :  { %v4450_v53 = vpop.eup %4449 }
0x2255   :  { %v4452_v46 = vpop.eup %4451  ;;  %v3148_v59 = vmul.f32 %v4450_v53, %v3128_v2 }
0x2256   :  { %v3147_v30 = vmul.f32 %v4452_v46, %v3127_v38 }
0x2258   :  { %3969 = vmatprep.mubr.msk.f32.mxu0 %vm243_vm3, %v3147_v30 }
0x2259   :  { %3970 = vmatmul.mubr.msk.f32.vlgmr.msra.gmra.mrb[26].mxu0 %vm243_vm3, %v3148_v59 }
0x225a   :  { %4197 = vmatpush3.bf16.msra.mxu0 %v4910_v9  ;;  %v3531_v9 = vld [vmem:[%s5257_s7 + $0x18] ss:$0 sm:$0xff]  ;;  %s4504_s7 = smov [#allocation2]  }
0x225b   :  { %4199 = vmatprep.subr.bf16.mxu0 %v4913_v42  ;;  %s3419_s12 = sshll.u32 %s4504_s7, 4  ;;  %s3420_s12 = int_to_ptr.vmem [resolvable:$true] %s3419_s12 }
0x225c   :  { %s4465_s13 = scalar_lea.vmem %s3420_s12, 256  ;;  %p4470_p1 = scmp.lt.s32.totalorder %s3420_s12, %s3420_s12 }
0x225d   :  { %p4466_p0 = scmp.ne.s32.totalorder %s3420_s12, %s4465_s13  ;;  %p4471_p2 = scmp.lt.s32.totalorder %s4465_s13, %s4465_s13 }
0x225e   :  { %4201 = vmatpush3.bf16.msra.mxu0 %v4913_v42 }
0x225f   :  { %4203 = vmatprep.subr.bf16.mxu0 %v4901_v47  ;;  %p4472_p3 = por %p4471_p2, %p4470_p1 }
0x2261   :  { %p4473_p4 = pnand %p4472_p3, %p4466_p0 }
0x232c   :  { %v3971_v31 = vpop.f32.mrb[26].mxu0 }
0x232d   :  { %v3221_v24 = vpop.f32.mrb[27].mxu0 }
0x232e   :  { %3980 = vmatprep.mubr.msk.f32.mxu0 %vm71_vm0, %v3221_v24 }
0x232f   :  { %3981 = vmatmul.mubr.msk.f32.vlgmr.msra.gmra.mrb[28].mxu0 %vm71_vm0, %v3971_v31 }
0x2330   :  { %4205 = vmatpush3.bf16.msra.mxu0 %v4901_v47  ;;  %3991 = vmatprep.mubr.msk.f32.mxu0 %vm71_vm0, %v5187_v20 }
0x2331   :  { %4207 = vmatprep.subr.bf16.mxu0 %v4906_v0 }
0x2334   :  { %4209 = vmatpush3.bf16.msra.mxu0 %v4906_v0 }
0x2337   :  { %3992 = vmatmul.mubr.msk.f32.vlgmr.msra.gmra.mrb[28].mxu0 %vm71_vm0, %v5189_v17 }
0x240a   :  { %v3993_v42 = vpop.f32.mrb[28].mxu0 }
0x240b   :  { %v3391_v1 = vadd.f32 %v3993_v42, %v3531_v9  ;;  %v3377_v61 = vpop.f32.mrb[29].mxu0 }
0x240c   :  { %v3390_v3 = vadd.f32 %v3531_v9, %v3377_v61 }
0x240d   :  { %v3533_v5 = vmul.f32 -1.442695, %v3391_v1 }
0x240e   :  { %v3532_v47 = vmul.f32 -1.442695, %v3390_v3 }
0x240f   :  { %4453 = vpow2.f32 %v3533_v5 }
0x2410   :  { %4455 = vpow2.f32 %v3532_v47 }
0x2419   :  { %v4454_v7 = vpop.eup %4453 }
0x241a   :  { %v4456_v18 = vpop.eup %4455  ;;  %v3399_v49 = vadd.f32 1.0, %v4454_v7 }
0x241b   :  { %v3398_v58 = vadd.f32 1.0, %v4456_v18 }
0x241c   :  { %4457 = vrcp.f32 %v3399_v49 }
0x241d   :  { %4459 = vrcp.f32 %v3398_v58 }
0x2426   :  { %v4458_v0 = vpop.eup %4457 }
0x2427   :  { %v4460_v50 = vpop.eup %4459  ;;  %v3407_v56 = vsub.f32 1.0, %v4458_v0  ;;  %v3405_v63 = vmul.f32 %v4458_v0, %v5189_v17 }
0x2428   :  { %v3406_v62 = vsub.f32 1.0, %v4460_v50  ;;  %v3404_v13 = vmul.f32 %v4460_v50, %v5187_v20 }
0x2429   :  { %v3409_v57 = vmul.f32 %v3971_v31, %v3407_v56 }
0x242a   :  { %v3408_v14 = vmul.f32 %v3406_v62, %v3221_v24 }
0x242b   :  { %v3411_v19 = vadd.f32 %v3409_v57, %v3405_v63 }
0x242c   :  { %v3410_v44 = vadd.f32 %v3408_v14, %v3404_v13 }
0x242d   :  { %3413 = vst.msk [vmem:[#allocation2 + $0x8] sm:$0xff] %vm71_vm0, %v3411_v19 }
0x242e   :  { %3412 = vst.msk [vmem:[#allocation2] sm:$0xff] %vm71_vm0, %v3410_v44 }
0x242f   :  { %4476 = shalt.err (!%p4473_p4)
}
0x2430   :  { %s4477_s16 = scalar_lea.hbm %s5259_s9, 256 }
0x2431   :  { %p4478_p5 = scmp.ne.s32.totalorder %s5259_s9, %s4477_s16  ;;  %p4481_p6 = scmp.lt.u32.totalorder %s4477_s16, %s5259_s9 }
0x2433   :  { %p4483_p7 = pnand %p4481_p6, %p4478_p5 }
0x2435   :  { %4486 = shalt.err (!%p4483_p7)
}
0x2436   :  { %s4505_s20 = smov 128  }
0x2437   :  { %3425 = dma.vmem_to_hbm [thread:$0]  %s3420_s12, 256, %s5259_s9, [#allocation3], %s4505_s20, %s4505_s20, %s5268_s1  }
0x2438   :  { %4487 = dma.done.wait [#allocation3], 256  }
0x2439   :  { %4488 = vsyncadd [#allocation3], 4294967040 }
0x243a   :  { %3429 = vsyncpa [#allocation3], 1 }

</bundles_post_ra>
